<compile_context>
chip_gen: v6e
topology: v6e:2x2x1
jax: 0.10.0
libtpu: 0.0.40
codegen_flags: <defaults>
</compile_context>

<pallas_src>
import jax
import jax.numpy as jnp
from jax.experimental import pallas as pl
from jax.experimental.pallas import tpu as pltpu


def _round_up(x, m):
    return ((x + m - 1) // m) * m


def _leaky_relu(x, slope=0.2):
    return jnp.where(x > 0, x, slope * x)


def discriminator_kernel(x_ref, w1_ref, b1_ref, w2_ref, b2_ref,
                         w3_ref, b3_ref, o_ref):
    # Layer 1: (TB, D)bf16 @ (D, 512)bf16 -> f32, + bias, LeakyReLU(0.2).
    h1 = jnp.dot(x_ref[...], w1_ref[...],
                 preferred_element_type=jnp.float32) + b1_ref[...]
    h1 = _leaky_relu(h1)

    # Layer 2: (TB, 512)bf16 @ (512, 256)bf16 -> f32, + bias, LeakyReLU(0.2).
    h2 = jnp.dot(h1.astype(jnp.bfloat16), w2_ref[...],
                 preferred_element_type=jnp.float32) + b2_ref[...]
    h2 = _leaky_relu(h2)

    # Layer 3: 1-wide output -> VPU multiply + lane reduce instead of a
    # 1-column MXU matmul (which would use 1/256 of the MXU lanes).
    logit = jnp.sum(h2 * w3_ref[...], axis=-1, keepdims=True) + b3_ref[...]

    # Sigmoid: exp on the EUP, exact reciprocal for the denominator.
    o_ref[...] = pl.reciprocal(1.0 + jnp.exp(-logit)).astype(o_ref.dtype)


def discriminator_forward(img, params, *, block_b=256):
    """img: (B, C, H, W) float32.  Returns validity (B, 1) float32."""
    B = img.shape[0]
    x = img.reshape(B, -1)                           # same as img.view(B, -1)
    D = x.shape[1]
    w1, b1, w2, b2, w3, b3 = params

    # MXU operands in bf16 (f32 accumulation inside the kernel).
    x_bf = x.astype(jnp.bfloat16)
    w1_bf = w1.astype(jnp.bfloat16)
    w2_bf = w2.astype(jnp.bfloat16)
    w3_row = w3.reshape(1, -1).astype(jnp.float32)   # (1, 256) for the VPU reduce

    # Batch tiling: TB rows per grid step (multiple of 8); pad B up to it.
    TB = min(block_b, _round_up(B, 8))
    B_pad = _round_up(B, TB)
    if B_pad != B:
        x_bf = jnp.pad(x_bf, ((0, B_pad - B), (0, 0)))
    num_blocks = pl.cdiv(B_pad, TB)

    # VMEM budget: double-buffered x/out tiles + resident weights + live f32
    # activations, with 2x headroom; clamped to a broadly safe range.
    vmem_est = (2 * TB * D * 2                              # x tile, 2 bufs, bf16
                + 2 * TB * 1 * 4                            # out tile, 2 bufs, f32
                + 2 * (w1_bf.size * 2 + w2_bf.size * 2)     # resident bf16 weights
                + (b1.size + b2.size + w3_row.size + b3.size) * 4
                + TB * 512 * 4 + TB * 256 * 4)              # h1 / h2 in f32
    vmem_limit = int(min(max(2 * vmem_est, 16 * 2**20), 48 * 2**20))

    cost = pl.CostEstimate(
        flops=2 * B_pad * (D * 512 + 512 * 256 + 256),
        transcendentals=B_pad,                              # one exp per row
        bytes_accessed=(x_bf.size * 2 + w1_bf.size * 2 + w2_bf.size * 2
                        + (b1.size + b2.size + w3_row.size + b3.size) * 4
                        + B_pad * 4))

    resident = lambda a: pl.BlockSpec(a.shape, lambda i: (0,) * a.ndim)

    out = pl.pallas_call(
        discriminator_kernel,
        out_shape=jax.ShapeDtypeStruct((B_pad, 1), jnp.float32),
        grid_spec=pltpu.PrefetchScalarGridSpec(
            num_scalar_prefetch=0,
            grid=(num_blocks,),
            in_specs=[
                pl.BlockSpec((TB, D), lambda i: (i, 0)),    # activation tile
                resident(w1_bf), resident(b1),
                resident(w2_bf), resident(b2),
                resident(w3_row), resident(b3),
            ],
            out_specs=pl.BlockSpec((TB, 1), lambda i: (i, 0)),
        ),
        compiler_params=pltpu.CompilerParams(
            dimension_semantics=("parallel",),
            vmem_limit_bytes=vmem_limit),
        cost_estimate=cost,
    )(x_bf, w1_bf, b1, w2_bf, b2, w3_row, b3)

    return out[:B]


def init_params(key, in_features):
    """Deterministic init mimicking nn.Linear's U(-1/sqrt(fan_in), 1/sqrt(fan_in)).
    Weights stored as (in, out); biases as (1, out) for TPU-friendly 2-D layout."""
    dims = [(in_features, 512), (512, 256), (256, 1)]
    params = []
    for (fan_in, fan_out) in dims:
        key, kw, kb = jax.random.split(key, 3)
        bound = 1.0 / (fan_in ** 0.5)
        w = jax.random.uniform(kw, (fan_in, fan_out), jnp.float32, -bound, bound)
        b = jax.random.uniform(kb, (1, fan_out), jnp.float32, -bound, bound)
        params += [w, b]
    return tuple(params)


def reference_forward(img, params):
    """Pure-JAX f32 reference for correctness checking."""
    w1, b1, w2, b2, w3, b3 = params
    x = img.reshape(img.shape[0], -1)
    h = x @ w1 + b1
    h = jnp.where(h > 0, h, 0.2 * h)
    h = h @ w2 + b2
    h = jnp.where(h > 0, h, 0.2 * h)
    return jax.nn.sigmoid(h @ w3 + b3)


if __name__ == "__main__":
    # Small synthetic shapes: batch=2, channels=4, img_size=16 -> D = 1024
    B, C, H, W = 2, 4, 16, 16
    key = jax.random.PRNGKey(0)
    k_img, k_par = jax.random.split(key)

    img = jax.random.normal(k_img, (B, C, H, W), dtype=jnp.float32)
    params = init_params(k_par, C * H * W)

    out = jax.block_until_ready(discriminator_forward(img, params))
    ref = reference_forward(img, params)

    assert out.shape == (B, 1), out.shape
    # bf16 MXU operands -> loosened tolerance vs the f32 reference.
    assert jnp.allclose(out, ref, atol=2e-2, rtol=2e-2), (
        f"mismatch vs reference: max abs diff = {jnp.max(jnp.abs(out - ref))}")

    print("KERNEL_OK")
</pallas_src>

<mosaic_0001>
module attributes {stable_mosaic.version = 11 : i64} {
  func.func @discriminator_kernel(%arg0: i32, %arg1: memref<8x1024xbf16, #tpu.memory_space<vmem>>, %arg2: memref<1024x512xbf16, #tpu.memory_space<vmem>>, %arg3: memref<1x512xf32, #tpu.memory_space<vmem>>, %arg4: memref<512x256xbf16, #tpu.memory_space<vmem>>, %arg5: memref<1x256xf32, #tpu.memory_space<vmem>>, %arg6: memref<1x256xf32, #tpu.memory_space<vmem>>, %arg7: memref<1x1xf32, #tpu.memory_space<vmem>>, %arg8: memref<8x1xf32, #tpu.memory_space<vmem>>) attributes {dimension_semantics = [#tpu.dimension_semantics<parallel>], iteration_bounds = array<i64: 1>, scalar_prefetch = 0 : i64, scratch_operands = 0 : i64, tpu.core_type = #tpu.core_type<tc>, window_params = [{transform_indices = @transform_0, window_bounds = array<i64: 8, 1024>}, {pipeline_mode = #tpu.pipeline_mode<synchronous>, transform_indices = @transform_1, window_bounds = array<i64: 1024, 512>}, {pipeline_mode = #tpu.pipeline_mode<synchronous>, transform_indices = @transform_2, window_bounds = array<i64: 1, 512>}, {pipeline_mode = #tpu.pipeline_mode<synchronous>, transform_indices = @transform_3, window_bounds = array<i64: 512, 256>}, {pipeline_mode = #tpu.pipeline_mode<synchronous>, transform_indices = @transform_4, window_bounds = array<i64: 1, 256>}, {pipeline_mode = #tpu.pipeline_mode<synchronous>, transform_indices = @transform_5, window_bounds = array<i64: 1, 256>}, {pipeline_mode = #tpu.pipeline_mode<synchronous>, transform_indices = @transform_6, window_bounds = array<i64: 1, 1>}, {transform_indices = @transform_7, window_bounds = array<i64: 8, 1>}]} {
    %c0 = arith.constant 0 : index
    %c0_0 = arith.constant 0 : index
    %0 = vector.load %arg1[%c0, %c0_0] : memref<8x1024xbf16, #tpu.memory_space<vmem>>, vector<8x1024xbf16>
    %c0_1 = arith.constant 0 : index
    %c0_2 = arith.constant 0 : index
    %1 = vector.load %arg2[%c0_1, %c0_2] : memref<1024x512xbf16, #tpu.memory_space<vmem>>, vector<1024x512xbf16>
    %cst = arith.constant dense<0.000000e+00> : vector<8x512xf32>
    %2 = tpu.matmul %0, %1, %cst {dimension_numbers = #tpu.dot_dimension_numbers<[1], [0], [0], [1], [0, 0, 1, 1], [], []>} : vector<8x1024xbf16>, vector<1024x512xbf16>, vector<8x512xf32> -> vector<8x512xf32>
    %c0_3 = arith.constant 0 : index
    %c0_4 = arith.constant 0 : index
    %3 = vector.load %arg3[%c0_3, %c0_4] : memref<1x512xf32, #tpu.memory_space<vmem>>, vector<1x512xf32>
    %4 = vector.broadcast %3 : vector<1x512xf32> to vector<8x512xf32>
    %5 = arith.addf %2, %4 : vector<8x512xf32>
    %cst_5 = arith.constant 0.000000e+00 : f32
    %6 = vector.broadcast %cst_5 : f32 to vector<8x512xf32>
    %7 = arith.cmpf ogt, %5, %6 : vector<8x512xf32>
    %cst_6 = arith.constant 2.000000e-01 : f32
    %8 = vector.broadcast %cst_6 : f32 to vector<8x512xf32>
    %9 = arith.mulf %8, %5 : vector<8x512xf32>
    %10 = arith.select %7, %5, %9 : vector<8x512xi1>, vector<8x512xf32>
    %11 = arith.truncf %10 : vector<8x512xf32> to vector<8x512xbf16>
    %c0_7 = arith.constant 0 : index
    %c0_8 = arith.constant 0 : index
    %12 = vector.load %arg4[%c0_7, %c0_8] : memref<512x256xbf16, #tpu.memory_space<vmem>>, vector<512x256xbf16>
    %cst_9 = arith.constant dense<0.000000e+00> : vector<8x256xf32>
    %13 = tpu.matmul %11, %12, %cst_9 {dimension_numbers = #tpu.dot_dimension_numbers<[1], [0], [0], [1], [0, 0, 1, 1], [], []>} : vector<8x512xbf16>, vector<512x256xbf16>, vector<8x256xf32> -> vector<8x256xf32>
    %c0_10 = arith.constant 0 : index
    %c0_11 = arith.constant 0 : index
    %14 = vector.load %arg5[%c0_10, %c0_11] : memref<1x256xf32, #tpu.memory_space<vmem>>, vector<1x256xf32>
    %15 = vector.broadcast %14 : vector<1x256xf32> to vector<8x256xf32>
    %16 = arith.addf %13, %15 : vector<8x256xf32>
    %cst_12 = arith.constant 0.000000e+00 : f32
    %17 = vector.broadcast %cst_12 : f32 to vector<8x256xf32>
    %18 = arith.cmpf ogt, %16, %17 : vector<8x256xf32>
    %cst_13 = arith.constant 2.000000e-01 : f32
    %19 = vector.broadcast %cst_13 : f32 to vector<8x256xf32>
    %20 = arith.mulf %19, %16 : vector<8x256xf32>
    %21 = arith.select %18, %16, %20 : vector<8x256xi1>, vector<8x256xf32>
    %c0_14 = arith.constant 0 : index
    %c0_15 = arith.constant 0 : index
    %22 = vector.load %arg6[%c0_14, %c0_15] : memref<1x256xf32, #tpu.memory_space<vmem>>, vector<1x256xf32>
    %23 = vector.broadcast %22 : vector<1x256xf32> to vector<8x256xf32>
    %24 = arith.mulf %21, %23 : vector<8x256xf32>
    %cst_16 = arith.constant dense<0.000000e+00> : vector<8xf32>
    %25 = vector.multi_reduction <add>, %24, %cst_16 [1] : vector<8x256xf32> to vector<8xf32>
    %26 = vector.shape_cast %25 : vector<8xf32> to vector<8x1xf32>
    %c0_17 = arith.constant 0 : index
    %c0_18 = arith.constant 0 : index
    %27 = vector.load %arg7[%c0_17, %c0_18] : memref<1x1xf32, #tpu.memory_space<vmem>>, vector<1x1xf32>
    %28 = vector.broadcast %27 : vector<1x1xf32> to vector<8x1xf32>
    %29 = arith.addf %26, %28 : vector<8x1xf32>
    %cst_19 = arith.constant 0.000000e+00 : f32
    %30 = vector.broadcast %cst_19 : f32 to vector<8x1xf32>
    %31 = arith.subf %30, %29 : vector<8x1xf32>
    %32 = math.exp %31 : vector<8x1xf32>
    %cst_20 = arith.constant 1.000000e+00 : f32
    %33 = vector.broadcast %cst_20 : f32 to vector<8x1xf32>
    %34 = arith.addf %33, %32 : vector<8x1xf32>
    %35 = tpu.reciprocal %34 : vector<8x1xf32> -> vector<8x1xf32>
    %c0_21 = arith.constant 0 : index
    %c0_22 = arith.constant 0 : index
    %36 = vector.load %arg8[%c0_21, %c0_22] : memref<8x1xf32, #tpu.memory_space<vmem>>, vector<8x1xf32>
    tpu.vector_store %arg8[%c0_21, %c0_22], %35 {strides = array<i32>} : memref<8x1xf32, #tpu.memory_space<vmem>>, vector<8x1xf32>,
    return
  }
  func.func @transform_0(%arg0: i32) -> (i32, i32) {
    %c0_i32 = arith.constant 0 : i32
    %c0_i32_0 = arith.constant 0 : i32
    return %arg0, %c0_i32 : i32, i32
  }
  func.func @transform_1(%arg0: i32) -> (i32, i32) {
    %c0_i32 = arith.constant 0 : i32
    %c0_i32_0 = arith.constant 0 : i32
    %c0_i32_1 = arith.constant 0 : i32
    return %c0_i32, %c0_i32_0 : i32, i32
  }
  func.func @transform_2(%arg0: i32) -> (i32, i32) {
    %c0_i32 = arith.constant 0 : i32
    %c0_i32_0 = arith.constant 0 : i32
    %c0_i32_1 = arith.constant 0 : i32
    return %c0_i32, %c0_i32_0 : i32, i32
  }
  func.func @transform_3(%arg0: i32) -> (i32, i32) {
    %c0_i32 = arith.constant 0 : i32
    %c0_i32_0 = arith.constant 0 : i32
    %c0_i32_1 = arith.constant 0 : i32
    return %c0_i32, %c0_i32_0 : i32, i32
  }
  func.func @transform_4(%arg0: i32) -> (i32, i32) {
    %c0_i32 = arith.constant 0 : i32
    %c0_i32_0 = arith.constant 0 : i32
    %c0_i32_1 = arith.constant 0 : i32
    return %c0_i32, %c0_i32_0 : i32, i32
  }
  func.func @transform_5(%arg0: i32) -> (i32, i32) {
    %c0_i32 = arith.constant 0 : i32
    %c0_i32_0 = arith.constant 0 : i32
    %c0_i32_1 = arith.constant 0 : i32
    return %c0_i32, %c0_i32_0 : i32, i32
  }
  func.func @transform_6(%arg0: i32) -> (i32, i32) {
    %c0_i32 = arith.constant 0 : i32
    %c0_i32_0 = arith.constant 0 : i32
    %c0_i32_1 = arith.constant 0 : i32
    return %c0_i32, %c0_i32_0 : i32, i32
  }
  func.func @transform_7(%arg0: i32) -> (i32, i32) {
    %c0_i32 = arith.constant 0 : i32
    %c0_i32_0 = arith.constant 0 : i32
    return %arg0, %c0_i32 : i32, i32
  }
}

</mosaic_0001>

<bundles_post_ra>
// kernel: tpu_custom_call.1
= control target key start
LH: loop header
LB: loop body
LE: loop exit
PB: predicated region body
PF: predicated region fallthrough
CT: control target
= control target key end

     0   :  { %s3564_s0 = inlined_call_operand.hbm [shape: bf16[8,1024], index: 0, kind: input, shape index: {}]   ;;  %s3565_s1 = inlined_call_operand.hbm [shape: bf16[1024,512], index: 1, kind: input, shape index: {}]   ;;  %s3566_s2 = inlined_call_operand.vmem [shape: f32[1,512], index: 2, kind: input, shape index: {}]   ;;  %s3567_s3 = inlined_call_operand.hbm [shape: bf16[512,256], index: 3, kind: input, shape index: {}]   ;;  %s3568_s4 = inlined_call_operand.vmem [shape: f32[1,256], index: 4, kind: input, shape index: {}]   ;;  %s3569_s5 = inlined_call_operand.vmem [shape: f32[1,256], index: 5, kind: input, shape index: {}]   ;;  %s3570_s6 = inlined_call_operand.<no memory space> [shape: f32[1,1], index: 6, kind: input, shape index: {}]   ;;  %s3571_s7 = inlined_call_operand.vmem [shape: f32[8,1], index: 7, kind: output, shape index: {}]  }
   0x1   :  { %v12_v0 = vstv %s3570_s6 }
   0x2   :  { %13 = vst [vmem:[#allocation2] sm:$0x1] %v12_v0 }
   0x3   :  { %14 = vsyncpa [#allocation4], 0 }
   0x4   :  { %15 = vsyncpa [#allocation6], 0  ;;  %s3415_s26 = smov [#allocation5]  }
   0x5   :  { %s31_s27 = sshll.u32 %s3415_s26, 4  ;;  %s32_s27 = int_to_ptr.vmem [resolvable:$true] %s31_s27 }
   0x6   :  { %s3359_s28 = scalar_lea.vmem %s32_s27, 32768  ;;  %p3364_p1 = scmp.lt.s32.totalorder %s32_s27, %s32_s27 }
   0x7   :  { %p3360_p0 = scmp.ne.s32.totalorder %s32_s27, %s3359_s28  ;;  %p3365_p2 = scmp.lt.s32.totalorder %s3359_s28, %s3359_s28 }
   0x9   :  { %p3366_p3 = por %p3365_p2, %p3364_p1 }
   0xb   :  { %p3367_p4 = pnand %p3366_p3, %p3360_p0 }
   0xd   :  { %3370 = shalt.err (!%p3367_p4)
}
   0xe   :  { %s3416_s29 = smov 256   ;;  %s3417_s30 = smov 16  }
   0xf   :  { %37 = dma.hbm_to_vmem [thread:$0]  %s3565_s1, 32768, %s32_s27, [#allocation6], %s3416_s29, %s3416_s29, %s3417_s30  }
  0x10   :  { %s3418_s6 = smov [#allocation3]   ;;  %s3419_s11 = smov [#allocation7]  }
  0x11   :  { %s22_s10 = sshll.u32 %s3418_s6, 4  ;;  %s45_s12 = sshll.u32 %s3419_s11, 4  ;;  %s23_s10 = int_to_ptr.vmem [resolvable:$true] %s22_s10  ;;  %s46_s12 = int_to_ptr.vmem [resolvable:$true] %s45_s12 }
  0x12   :  { %s3379_s13 = scalar_lea.vmem %s23_s10, 512  ;;  %p3384_p6 = scmp.lt.s32.totalorder %s23_s10, %s23_s10 }
  0x13   :  { %p3380_p5 = scmp.ne.s32.totalorder %s23_s10, %s3379_s13  ;;  %p3385_p7 = scmp.lt.s32.totalorder %s3379_s13, %s3379_s13 }
  0x15   :  { %p3386_p8 = por %p3385_p7, %p3384_p6 }
  0x17   :  { %p3387_p9 = pnand %p3386_p8, %p3380_p5 }
  0x19   :  { %3390 = shalt.err (!%p3387_p9)
}
  0x1a   :  { %25 = dma.hbm_to_vmem [thread:$0]  %s3564_s0, 512, %s23_s10, [#allocation4]  }
  0x1b   :  { %s3399_s16 = scalar_lea.vmem %s46_s12, 8192  ;;  %p3404_p11 = scmp.lt.s32.totalorder %s46_s12, %s46_s12 }
  0x1c   :  { %p3400_p10 = scmp.ne.s32.totalorder %s46_s12, %s3399_s16  ;;  %p3405_p12 = scmp.lt.s32.totalorder %s3399_s16, %s3399_s16 }
  0x1e   :  { %p3406_p13 = por %p3405_p12, %p3404_p11 }
  0x20   :  { %p3407_p0 = pnand %p3406_p13, %p3400_p10 }
  0x22   :  { %3410 = shalt.err (!%p3407_p0)
}
  0x23   :  { %s3420_s1 = smov 128   ;;  %s3421_s17 = smov 8  }
  0x24   :  { %51 = dma.hbm_to_vmem [thread:$0]  %s3567_s3, 8192, %s46_s12, [#allocation6], %s3420_s1, %s3420_s1, %s3421_s17  }
  0x25   :  { %3411 = dma.done.wait [#allocation4], 512  }
  0x26   :  { %3412 = vsyncadd [#allocation4], 4294966784 }
  0x27   :  { %3413 = dma.done.wait [#allocation6], 40960  }
  0x28   :  { %3414 = vsyncadd [#allocation6], 4294926336  ;;  %v2859_v1 = vld [vmem:[#allocation5 + $0xe4] ss:$16 sps:$4 sm:$0xff]   ;;  %v2863_v3 = vld [vmem:[#allocation5 + $0xe0] ss:$16 sps:$4 sm:$0xff]  }
  0x29   :  { %v2861_v2 = vld [vmem:[#allocation5 + $0x2e4] ss:$16 sps:$4 sm:$0xff]   ;;  %1657 = vmatprep.subr.bf16.mxu0 %v2859_v1  ;;  %v2864_v4 = vld [vmem:[#allocation5 + $0x2e0] ss:$16 sps:$4 sm:$0xff]   ;;  %v68_v49 = vld [vmem:[#allocation3 + $0x8] sm:$0xff]  ;;  %vm2515_vm6 = vcmask 7168  }
  0x2a   :  { %1698 = vmatprep.subr.bf16.mxu1 %v2861_v2  ;;  %v2865_v5 = vld [vmem:[#allocation5 + $0xc4] ss:$16 sps:$4 sm:$0xff]   ;;  %1658 = vmatpush1.bf16.msra.mxu0 %v2863_v3  ;;  %v2869_v7 = vld [vmem:[#allocation5 + $0xc0] ss:$16 sps:$4 sm:$0xff]   ;;  %v3476_v52 = vcombine.high %v68_v49, %v68_v49 }
  0x2b   :  { %1699 = vmatpush1.bf16.msra.mxu1 %v2864_v4  ;;  %v2867_v6 = vld [vmem:[#allocation5 + $0x2c4] ss:$16 sps:$4 sm:$0xff]   ;;  %1659 = vmatprep.subr.bf16.mxu0 %v2865_v5  ;;  %v2870_v8 = vld [vmem:[#allocation5 + $0x2c0] ss:$16 sps:$4 sm:$0xff]  }
  0x2c   :  { %1700 = vmatprep.subr.bf16.mxu1 %v2867_v6  ;;  %v2871_v9 = vld [vmem:[#allocation5 + $0xa4] ss:$16 sps:$4 sm:$0xff]   ;;  %v2875_v11 = vld [vmem:[#allocation5 + $0xa0] ss:$16 sps:$4 sm:$0xff]   ;;  %1730 = vmatprep.mubr.bf16.mxu1 %v3476_v52 }
  0x2d   :  { %v2873_v10 = vld [vmem:[#allocation5 + $0x2a4] ss:$16 sps:$4 sm:$0xff]   ;;  %v2876_v12 = vld [vmem:[#allocation5 + $0x2a0] ss:$16 sps:$4 sm:$0xff]  }
  0x2e   :  { %1660 = vmatpush1.bf16.msra.mxu0 %v2869_v7  ;;  %v2877_v13 = vld [vmem:[#allocation5 + $0x84] ss:$16 sps:$4 sm:$0xff]   ;;  %v2881_v15 = vld [vmem:[#allocation5 + $0x80] ss:$16 sps:$4 sm:$0xff]  }
  0x2f   :  { %1701 = vmatpush1.bf16.msra.mxu1 %v2870_v8  ;;  %1661 = vmatprep.subr.bf16.mxu0 %v2871_v9  ;;  %v2879_v14 = vld [vmem:[#allocation5 + $0x284] ss:$16 sps:$4 sm:$0xff]   ;;  %v2882_v16 = vld [vmem:[#allocation5 + $0x280] ss:$16 sps:$4 sm:$0xff]   ;;  %v3482_v8 = vcombine.low %v68_v49, %v68_v49 }
  0x30   :  { %1702 = vmatprep.subr.bf16.mxu1 %v2873_v10  ;;  %v2883_v17 = vld [vmem:[#allocation5 + $0x64] ss:$16 sps:$4 sm:$0xff]   ;;  %v2887_v19 = vld [vmem:[#allocation5 + $0x60] ss:$16 sps:$4 sm:$0xff]  }
  0x31   :  { %v2885_v18 = vld [vmem:[#allocation5 + $0x264] ss:$16 sps:$4 sm:$0xff]   ;;  %v2888_v20 = vld [vmem:[#allocation5 + $0x260] ss:$16 sps:$4 sm:$0xff]  }
  0x32   :  { %1662 = vmatpush1.bf16.msra.mxu0 %v2875_v11  ;;  %v2889_v21 = vld [vmem:[#allocation5 + $0x44] ss:$16 sps:$4 sm:$0xff]   ;;  %v2893_v23 = vld [vmem:[#allocation5 + $0x40] ss:$16 sps:$4 sm:$0xff]  }
  0x33   :  { %1703 = vmatpush1.bf16.msra.mxu1 %v2876_v12  ;;  %1663 = vmatprep.subr.bf16.mxu0 %v2877_v13  ;;  %v2891_v22 = vld [vmem:[#allocation5 + $0x244] ss:$16 sps:$4 sm:$0xff]   ;;  %v2894_v24 = vld [vmem:[#allocation5 + $0x240] ss:$16 sps:$4 sm:$0xff]  }
  0x34   :  { %1704 = vmatprep.subr.bf16.mxu1 %v2879_v14  ;;  %v2895_v25 = vld [vmem:[#allocation5 + $0x24] ss:$16 sps:$4 sm:$0xff]   ;;  %v2899_v27 = vld [vmem:[#allocation5 + $0x20] ss:$16 sps:$4 sm:$0xff]  }
  0x35   :  { %v2897_v26 = vld [vmem:[#allocation5 + $0x224] ss:$16 sps:$4 sm:$0xff]   ;;  %v2900_v28 = vld [vmem:[#allocation5 + $0x220] ss:$16 sps:$4 sm:$0xff]  }
  0x36   :  { %1664 = vmatpush1.bf16.msra.mxu0 %v2881_v15  ;;  %v2901_v29 = vld [vmem:[#allocation5 + $0x4] ss:$16 sps:$4 sm:$0xff]   ;;  %v2905_v31 = vld [vmem:[#allocation5] ss:$16 sps:$4 sm:$0xff]  }
  0x37   :  { %1705 = vmatpush1.bf16.msra.mxu1 %v2882_v16  ;;  %1665 = vmatprep.subr.bf16.mxu0 %v2883_v17  ;;  %v2903_v30 = vld [vmem:[#allocation5 + $0x204] ss:$16 sps:$4 sm:$0xff]   ;;  %v2906_v32 = vld [vmem:[#allocation5 + $0x200] ss:$16 sps:$4 sm:$0xff]  }
  0x38   :  { %1706 = vmatprep.subr.bf16.mxu1 %v2885_v18  ;;  %v2907_v33 = vld [vmem:[#allocation5 + $0x1e4] ss:$16 sps:$4 sm:$0xff]   ;;  %v2911_v35 = vld [vmem:[#allocation5 + $0x1e0] ss:$16 sps:$4 sm:$0xff]  }
  0x39   :  { %v2909_v34 = vld [vmem:[#allocation5 + $0x3e4] ss:$16 sps:$4 sm:$0xff]   ;;  %v2912_v36 = vld [vmem:[#allocation5 + $0x3e0] ss:$16 sps:$4 sm:$0xff]  }
  0x3a   :  { %1666 = vmatpush1.bf16.msra.mxu0 %v2887_v19  ;;  %v2913_v37 = vld [vmem:[#allocation5 + $0x1c4] ss:$16 sps:$4 sm:$0xff]   ;;  %v2917_v39 = vld [vmem:[#allocation5 + $0x1c0] ss:$16 sps:$4 sm:$0xff]  }
  0x3b   :  { %1707 = vmatpush1.bf16.msra.mxu1 %v2888_v20  ;;  %1667 = vmatprep.subr.bf16.mxu0 %v2889_v21  ;;  %v2915_v38 = vld [vmem:[#allocation5 + $0x3c4] ss:$16 sps:$4 sm:$0xff]   ;;  %v2918_v40 = vld [vmem:[#allocation5 + $0x3c0] ss:$16 sps:$4 sm:$0xff]  }
  0x3c   :  { %1708 = vmatprep.subr.bf16.mxu1 %v2891_v22  ;;  %v2919_v41 = vld [vmem:[#allocation5 + $0x1a4] ss:$16 sps:$4 sm:$0xff]   ;;  %v2923_v43 = vld [vmem:[#allocation5 + $0x1a0] ss:$16 sps:$4 sm:$0xff]  }
  0x3d   :  { %v2921_v42 = vld [vmem:[#allocation5 + $0x3a4] ss:$16 sps:$4 sm:$0xff]   ;;  %v2924_v44 = vld [vmem:[#allocation5 + $0x3a0] ss:$16 sps:$4 sm:$0xff]  }
  0x3e   :  { %1668 = vmatpush1.bf16.msra.mxu0 %v2893_v23  ;;  %v2925_v45 = vld [vmem:[#allocation5 + $0x184] ss:$16 sps:$4 sm:$0xff]   ;;  %v2929_v50 = vld [vmem:[#allocation5 + $0x180] ss:$16 sps:$4 sm:$0xff]  }
  0x3f   :  { %1709 = vmatpush1.bf16.msra.mxu1 %v2894_v24  ;;  %1669 = vmatprep.subr.bf16.mxu0 %v2895_v25  ;;  %v2927_v46 = vld [vmem:[#allocation5 + $0x384] ss:$16 sps:$4 sm:$0xff]   ;;  %v2930_v51 = vld [vmem:[#allocation5 + $0x380] ss:$16 sps:$4 sm:$0xff]  }
  0x40   :  { %1710 = vmatprep.subr.bf16.mxu1 %v2897_v26  ;;  %v67_v47 = vld [vmem:[#allocation3] sm:$0xff] }
  0x41   :  { %v3474_v48 = vcombine.high %v67_v47, %v67_v47  ;;  %v2931_v53 = vld [vmem:[#allocation5 + $0x164] ss:$16 sps:$4 sm:$0xff]   ;;  %v2935_v55 = vld [vmem:[#allocation5 + $0x160] ss:$16 sps:$4 sm:$0xff]   ;;  %v3480_v7 = vcombine.low %v67_v47, %v67_v47 }
  0x42   :  { %1670 = vmatpush1.bf16.msra.mxu0 %v2899_v27  ;;  %v2933_v54 = vld [vmem:[#allocation5 + $0x364] ss:$16 sps:$4 sm:$0xff]   ;;  %v2936_v56 = vld [vmem:[#allocation5 + $0x360] ss:$16 sps:$4 sm:$0xff]  }
  0x43   :  { %1711 = vmatpush1.bf16.msra.mxu1 %v2900_v28  ;;  %1671 = vmatprep.subr.bf16.mxu0 %v2901_v29  ;;  %v2937_v57 = vld [vmem:[#allocation5 + $0x144] ss:$16 sps:$4 sm:$0xff]   ;;  %v2941_v59 = vld [vmem:[#allocation5 + $0x140] ss:$16 sps:$4 sm:$0xff]  }
  0x44   :  { %1712 = vmatprep.subr.bf16.mxu1 %v2903_v30  ;;  %1689 = vmatprep.mubr.bf16.mxu0 %v3474_v48  ;;  %v2939_v58 = vld [vmem:[#allocation5 + $0x344] ss:$16 sps:$4 sm:$0xff]   ;;  %v2942_v60 = vld [vmem:[#allocation5 + $0x340] ss:$16 sps:$4 sm:$0xff]  }
  0x45   :  { %v2943_v61 = vld [vmem:[#allocation5 + $0x124] ss:$16 sps:$4 sm:$0xff]   ;;  %v2947_v63 = vld [vmem:[#allocation5 + $0x120] ss:$16 sps:$4 sm:$0xff]  }
  0x46   :  { %1672 = vmatpush1.bf16.msra.mxu0 %v2905_v31  ;;  %v2945_v62 = vld [vmem:[#allocation5 + $0x324] ss:$16 sps:$4 sm:$0xff]   ;;  %v2948_v0 = vld [vmem:[#allocation5 + $0x320] ss:$16 sps:$4 sm:$0xff]  }
  0x47   :  { %1713 = vmatpush1.bf16.msra.mxu1 %v2906_v32  ;;  %1673 = vmatprep.subr.bf16.mxu0 %v2907_v33  ;;  %v2949_v1 = vld [vmem:[#allocation5 + $0x104] ss:$16 sps:$4 sm:$0xff]   ;;  %v2953_v3 = vld [vmem:[#allocation5 + $0x100] ss:$16 sps:$4 sm:$0xff]  }
  0x48   :  { %1714 = vmatprep.subr.bf16.mxu1 %v2909_v34  ;;  %v2951_v2 = vld [vmem:[#allocation5 + $0x304] ss:$16 sps:$4 sm:$0xff]   ;;  %v2954_v4 = vld [vmem:[#allocation5 + $0x300] ss:$16 sps:$4 sm:$0xff]   ;;  %v3488_v34 = vld [vmem:[#allocation3 + $0x18] sm:$0xff] }
  0x49   :  { %v2961_v5 = vld [vmem:[#allocation5 + $0x4e4] ss:$16 sps:$4 sm:$0xff]   ;;  %v2959_v9 = vld [vmem:[#allocation5 + $0x4e0] ss:$16 sps:$4 sm:$0xff]  }
  0x4a   :  { %1674 = vmatpush2.bf16.msra.mxu0 %v2911_v35  ;;  %v2964_v6 = vld [vmem:[#allocation5 + $0x6e4] ss:$16 sps:$4 sm:$0xff]   ;;  %v2962_v10 = vld [vmem:[#allocation5 + $0x6e0] ss:$16 sps:$4 sm:$0xff]  }
  0x4b   :  { %1715 = vmatpush2.bf16.msra.mxu1 %v2912_v36  ;;  %1675 = vmatprep.subr.bf16.mxu0 %v2913_v37  ;;  %v2967_v11 = vld [vmem:[#allocation5 + $0x4c4] ss:$16 sps:$4 sm:$0xff]   ;;  %v2965_v13 = vld [vmem:[#allocation5 + $0x4c0] ss:$16 sps:$4 sm:$0xff]  }
  0x4c   :  { %1716 = vmatprep.subr.bf16.mxu1 %v2915_v38  ;;  %v2970_v12 = vld [vmem:[#allocation5 + $0x6c4] ss:$16 sps:$4 sm:$0xff]   ;;  %v2968_v14 = vld [vmem:[#allocation5 + $0x6c0] ss:$16 sps:$4 sm:$0xff]   ;;  %v3496_v38 = vcombine.high %v3488_v34, %v3488_v34 }
  0x4d   :  { %v2973_v15 = vld [vmem:[#allocation5 + $0x4a4] ss:$16 sps:$4 sm:$0xff]   ;;  %v2971_v17 = vld [vmem:[#allocation5 + $0x4a0] ss:$16 sps:$4 sm:$0xff]  }
  0x4e   :  { %1676 = vmatpush2.bf16.msra.mxu0 %v2917_v39  ;;  %v2976_v16 = vld [vmem:[#allocation5 + $0x6a4] ss:$16 sps:$4 sm:$0xff]   ;;  %v2974_v18 = vld [vmem:[#allocation5 + $0x6a0] ss:$16 sps:$4 sm:$0xff]  }
  0x4f   :  { %1717 = vmatpush2.bf16.msra.mxu1 %v2918_v40  ;;  %1677 = vmatprep.subr.bf16.mxu0 %v2919_v41  ;;  %v2979_v19 = vld [vmem:[#allocation5 + $0x484] ss:$16 sps:$4 sm:$0xff]   ;;  %v2977_v21 = vld [vmem:[#allocation5 + $0x480] ss:$16 sps:$4 sm:$0xff]  }
  0x50   :  { %1718 = vmatprep.subr.bf16.mxu1 %v2921_v42  ;;  %v2982_v20 = vld [vmem:[#allocation5 + $0x684] ss:$16 sps:$4 sm:$0xff]   ;;  %v2980_v22 = vld [vmem:[#allocation5 + $0x680] ss:$16 sps:$4 sm:$0xff]  }
  0x51   :  { %v2985_v23 = vld [vmem:[#allocation5 + $0x464] ss:$16 sps:$4 sm:$0xff]   ;;  %v2983_v25 = vld [vmem:[#allocation5 + $0x460] ss:$16 sps:$4 sm:$0xff]  }
  0x52   :  { %1678 = vmatpush2.bf16.msra.mxu0 %v2923_v43  ;;  %v2988_v24 = vld [vmem:[#allocation5 + $0x664] ss:$16 sps:$4 sm:$0xff]   ;;  %v2986_v26 = vld [vmem:[#allocation5 + $0x660] ss:$16 sps:$4 sm:$0xff]  }
  0x53   :  { %1719 = vmatpush2.bf16.msra.mxu1 %v2924_v44  ;;  %1679 = vmatprep.subr.bf16.mxu0 %v2925_v45  ;;  %v2991_v27 = vld [vmem:[#allocation5 + $0x444] ss:$16 sps:$4 sm:$0xff]   ;;  %v2989_v29 = vld [vmem:[#allocation5 + $0x440] ss:$16 sps:$4 sm:$0xff]  }
  0x54   :  { %1720 = vmatprep.subr.bf16.mxu1 %v2927_v46  ;;  %v2994_v28 = vld [vmem:[#allocation5 + $0x644] ss:$16 sps:$4 sm:$0xff]   ;;  %v2992_v30 = vld [vmem:[#allocation5 + $0x640] ss:$16 sps:$4 sm:$0xff]  }
  0x55   :  { %v2997_v31 = vld [vmem:[#allocation5 + $0x424] ss:$16 sps:$4 sm:$0xff]   ;;  %v2995_v35 = vld [vmem:[#allocation5 + $0x420] ss:$16 sps:$4 sm:$0xff]  }
  0x56   :  { %1680 = vmatpush2.bf16.msra.mxu0 %v2929_v50  ;;  %v3000_v32 = vld [vmem:[#allocation5 + $0x624] ss:$16 sps:$4 sm:$0xff]   ;;  %v2998_v36 = vld [vmem:[#allocation5 + $0x620] ss:$16 sps:$4 sm:$0xff]  }
  0x57   :  { %1721 = vmatpush2.bf16.msra.mxu1 %v2930_v51  ;;  %1681 = vmatprep.subr.bf16.mxu0 %v2931_v53  ;;  %v3486_v33 = vld [vmem:[#allocation3 + $0x10] sm:$0xff] }
  0x58   :  { %1722 = vmatprep.subr.bf16.mxu1 %v2933_v54  ;;  %v3492_v37 = vcombine.high %v3486_v33, %v3486_v33  ;;  %v3003_v39 = vld [vmem:[#allocation5 + $0x404] ss:$16 sps:$4 sm:$0xff]   ;;  %v3001_v41 = vld [vmem:[#allocation5 + $0x400] ss:$16 sps:$4 sm:$0xff]  }
  0x59   :  { %v3006_v40 = vld [vmem:[#allocation5 + $0x604] ss:$16 sps:$4 sm:$0xff]   ;;  %v3004_v42 = vld [vmem:[#allocation5 + $0x600] ss:$16 sps:$4 sm:$0xff]  }
  0x5a   :  { %1682 = vmatpush2.bf16.msra.mxu0 %v2935_v55  ;;  %v3009_v43 = vld [vmem:[#allocation5 + $0x5e4] ss:$16 sps:$4 sm:$0xff]   ;;  %v3007_v45 = vld [vmem:[#allocation5 + $0x5e0] ss:$16 sps:$4 sm:$0xff]  }
  0x5b   :  { %1723 = vmatpush2.bf16.msra.mxu1 %v2936_v56  ;;  %1683 = vmatprep.subr.bf16.mxu0 %v2937_v57  ;;  %v3012_v44 = vld [vmem:[#allocation5 + $0x7e4] ss:$16 sps:$4 sm:$0xff]   ;;  %v3010_v46 = vld [vmem:[#allocation5 + $0x7e0] ss:$16 sps:$4 sm:$0xff]  }
  0x5c   :  { %1724 = vmatprep.subr.bf16.mxu1 %v2939_v58  ;;  %v3015_v47 = vld [vmem:[#allocation5 + $0x5c4] ss:$16 sps:$4 sm:$0xff]   ;;  %v3013_v50 = vld [vmem:[#allocation5 + $0x5c0] ss:$16 sps:$4 sm:$0xff]  }
  0x5d   :  { %v3018_v49 = vld [vmem:[#allocation5 + $0x7c4] ss:$16 sps:$4 sm:$0xff]   ;;  %v3016_v51 = vld [vmem:[#allocation5 + $0x7c0] ss:$16 sps:$4 sm:$0xff]  }
  0x5e   :  { %1684 = vmatpush2.bf16.msra.mxu0 %v2941_v59  ;;  %v3021_v53 = vld [vmem:[#allocation5 + $0x5a4] ss:$16 sps:$4 sm:$0xff]   ;;  %v3019_v55 = vld [vmem:[#allocation5 + $0x5a0] ss:$16 sps:$4 sm:$0xff]  }
  0x5f   :  { %1725 = vmatpush2.bf16.msra.mxu1 %v2942_v60  ;;  %1685 = vmatprep.subr.bf16.mxu0 %v2943_v61  ;;  %v3024_v54 = vld [vmem:[#allocation5 + $0x7a4] ss:$16 sps:$4 sm:$0xff]   ;;  %v3022_v56 = vld [vmem:[#allocation5 + $0x7a0] ss:$16 sps:$4 sm:$0xff]  }
  0x60   :  { %1726 = vmatprep.subr.bf16.mxu1 %v2945_v62  ;;  %v3027_v57 = vld [vmem:[#allocation5 + $0x584] ss:$16 sps:$4 sm:$0xff]   ;;  %v3025_v59 = vld [vmem:[#allocation5 + $0x580] ss:$16 sps:$4 sm:$0xff]  }
  0x61   :  { %v3030_v58 = vld [vmem:[#allocation5 + $0x784] ss:$16 sps:$4 sm:$0xff]   ;;  %v3028_v60 = vld [vmem:[#allocation5 + $0x780] ss:$16 sps:$4 sm:$0xff]  }
  0x62   :  { %1686 = vmatpush2.bf16.msra.mxu0 %v2947_v63  ;;  %v3033_v61 = vld [vmem:[#allocation5 + $0x564] ss:$16 sps:$4 sm:$0xff]   ;;  %v3031_v63 = vld [vmem:[#allocation5 + $0x560] ss:$16 sps:$4 sm:$0xff]  }
  0x63   :  { %1727 = vmatpush2.bf16.msra.mxu1 %v2948_v0  ;;  %1687 = vmatprep.subr.bf16.mxu0 %v2949_v1  ;;  %v3036_v62 = vld [vmem:[#allocation5 + $0x764] ss:$16 sps:$4 sm:$0xff]   ;;  %v3034_v0 = vld [vmem:[#allocation5 + $0x760] ss:$16 sps:$4 sm:$0xff]  }
  0x64   :  { %1728 = vmatprep.subr.bf16.mxu1 %v2951_v2  ;;  %v3039_v1 = vld [vmem:[#allocation5 + $0x544] ss:$16 sps:$4 sm:$0xff]  }
  0x65   :  { %v3042_v2 = vld [vmem:[#allocation5 + $0x744] ss:$16 sps:$4 sm:$0xff]  }
  0x66   :  { %1688 = vmatpush2.bf16.msra.mxu0 %v2953_v3  ;;  %v3037_v3 = vld [vmem:[#allocation5 + $0x540] ss:$16 sps:$4 sm:$0xff]  }
  0x67   :  { %1729 = vmatpush2.bf16.msra.mxu1 %v2954_v4  ;;  %1739 = vmatprep.subr.bf16.mxu0 %v2961_v5  ;;  %v3040_v4 = vld [vmem:[#allocation5 + $0x740] ss:$16 sps:$4 sm:$0xff]   ;;  %v3045_v5 = vld [vmem:[#allocation5 + $0x524] ss:$16 sps:$4 sm:$0xff]  }
  0x68   :  { %1780 = vmatprep.subr.bf16.mxu1 %v2964_v6  ;;  %v3048_v6 = vld [vmem:[#allocation5 + $0x724] ss:$16 sps:$4 sm:$0xff]  }
  0x69   :  { %1690 = vmatmul.mubr.bf16.vlgmr.msra.gmra.mxu0 %v3480_v7 }
  0x6a   :  { %1731 = vmatmul.mubr.bf16.vlgmr.msra.gmra.mxu1 %v3482_v8  ;;  %1740 = vmatpush1.bf16.msra.mxu0 %v2959_v9  ;;  %v3043_v9 = vld [vmem:[#allocation5 + $0x520] ss:$16 sps:$4 sm:$0xff]  }
  0x6b   :  { %1781 = vmatpush1.bf16.msra.mxu1 %v2962_v10  ;;  %1741 = vmatprep.subr.bf16.mxu0 %v2967_v11  ;;  %v3046_v10 = vld [vmem:[#allocation5 + $0x720] ss:$16 sps:$4 sm:$0xff]   ;;  %v3051_v11 = vld [vmem:[#allocation5 + $0x504] ss:$16 sps:$4 sm:$0xff]  }
  0x6c   :  { %1782 = vmatprep.subr.bf16.mxu1 %v2970_v12  ;;  %1771 = vmatprep.mubr.bf16.mxu0 %v3492_v37  ;;  %v3054_v12 = vld [vmem:[#allocation5 + $0x704] ss:$16 sps:$4 sm:$0xff]  }
  0x6d   :  { %1812 = vmatprep.mubr.bf16.mxu1 %v3496_v38 }
  0x6e   :  { %1742 = vmatpush1.bf16.msra.mxu0 %v2965_v13  ;;  %v3049_v13 = vld [vmem:[#allocation5 + $0x500] ss:$16 sps:$4 sm:$0xff]  }
  0x6f   :  { %1783 = vmatpush1.bf16.msra.mxu1 %v2968_v14  ;;  %1743 = vmatprep.subr.bf16.mxu0 %v2973_v15  ;;  %v3052_v14 = vld [vmem:[#allocation5 + $0x700] ss:$16 sps:$4 sm:$0xff]   ;;  %v3061_v15 = vld [vmem:[#allocation5 + $0xec] ss:$16 sps:$4 sm:$0xff]  }
  0x70   :  { %1784 = vmatprep.subr.bf16.mxu1 %v2976_v16  ;;  %v3064_v16 = vld [vmem:[#allocation5 + $0x2ec] ss:$16 sps:$4 sm:$0xff]  }
  0x72   :  { %1744 = vmatpush1.bf16.msra.mxu0 %v2971_v17  ;;  %v3502_v17 = vcombine.low %v3486_v33, %v3486_v33  ;;  %v3085_v33 = vld [vmem:[#allocation5 + $0x6c] ss:$16 sps:$4 sm:$0xff]  }
  0x73   :  { %1785 = vmatpush1.bf16.msra.mxu1 %v2974_v18  ;;  %1745 = vmatprep.subr.bf16.mxu0 %v2979_v19  ;;  %v3506_v18 = vcombine.low %v3488_v34, %v3488_v34  ;;  %v3059_v19 = vld [vmem:[#allocation5 + $0xe8] ss:$16 sps:$4 sm:$0xff]   ;;  %v3088_v34 = vld [vmem:[#allocation5 + $0x26c] ss:$16 sps:$4 sm:$0xff]  }
  0x74   :  { %1786 = vmatprep.subr.bf16.mxu1 %v2982_v20  ;;  %v3062_v20 = vld [vmem:[#allocation5 + $0x2e8] ss:$16 sps:$4 sm:$0xff]  }
  0x76   :  { %1746 = vmatpush1.bf16.msra.mxu0 %v2977_v21  ;;  %v3067_v21 = vld [vmem:[#allocation5 + $0xcc] ss:$16 sps:$4 sm:$0xff]  }
  0x77   :  { %1787 = vmatpush1.bf16.msra.mxu1 %v2980_v22  ;;  %1747 = vmatprep.subr.bf16.mxu0 %v2985_v23  ;;  %v3070_v22 = vld [vmem:[#allocation5 + $0x2cc] ss:$16 sps:$4 sm:$0xff]   ;;  %v3065_v23 = vld [vmem:[#allocation5 + $0xc8] ss:$16 sps:$4 sm:$0xff]  }
  0x78   :  { %1788 = vmatprep.subr.bf16.mxu1 %v2988_v24  ;;  %v3068_v24 = vld [vmem:[#allocation5 + $0x2c8] ss:$16 sps:$4 sm:$0xff]  }
  0x7a   :  { %1748 = vmatpush1.bf16.msra.mxu0 %v2983_v25  ;;  %v3073_v25 = vld [vmem:[#allocation5 + $0xac] ss:$16 sps:$4 sm:$0xff]  }
  0x7b   :  { %1789 = vmatpush1.bf16.msra.mxu1 %v2986_v26  ;;  %1749 = vmatprep.subr.bf16.mxu0 %v2991_v27  ;;  %v3076_v26 = vld [vmem:[#allocation5 + $0x2ac] ss:$16 sps:$4 sm:$0xff]   ;;  %v3071_v27 = vld [vmem:[#allocation5 + $0xa8] ss:$16 sps:$4 sm:$0xff]  }
  0x7c   :  { %1790 = vmatprep.subr.bf16.mxu1 %v2994_v28  ;;  %v3074_v28 = vld [vmem:[#allocation5 + $0x2a8] ss:$16 sps:$4 sm:$0xff]  }
  0x7e   :  { %1750 = vmatpush1.bf16.msra.mxu0 %v2989_v29  ;;  %v3079_v29 = vld [vmem:[#allocation5 + $0x8c] ss:$16 sps:$4 sm:$0xff]  }
  0x7f   :  { %1791 = vmatpush1.bf16.msra.mxu1 %v2992_v30  ;;  %1751 = vmatprep.subr.bf16.mxu0 %v2997_v31  ;;  %v3082_v30 = vld [vmem:[#allocation5 + $0x28c] ss:$16 sps:$4 sm:$0xff]   ;;  %v3077_v31 = vld [vmem:[#allocation5 + $0x88] ss:$16 sps:$4 sm:$0xff]  }
  0x80   :  { %1792 = vmatprep.subr.bf16.mxu1 %v3000_v32  ;;  %v3080_v32 = vld [vmem:[#allocation5 + $0x288] ss:$16 sps:$4 sm:$0xff]  }
  0x82   :  { %1752 = vmatpush1.bf16.msra.mxu0 %v2995_v35  ;;  %v3083_v35 = vld [vmem:[#allocation5 + $0x68] ss:$16 sps:$4 sm:$0xff]  }
  0x83   :  { %1793 = vmatpush1.bf16.msra.mxu1 %v2998_v36  ;;  %1753 = vmatprep.subr.bf16.mxu0 %v3003_v39  ;;  %v3094_v36 = vld [vmem:[#allocation5 + $0x24c] ss:$16 sps:$4 sm:$0xff]   ;;  %v3089_v39 = vld [vmem:[#allocation5 + $0x48] ss:$16 sps:$4 sm:$0xff]  }
  0x84   :  { %1794 = vmatprep.subr.bf16.mxu1 %v3006_v40  ;;  %v3092_v40 = vld [vmem:[#allocation5 + $0x248] ss:$16 sps:$4 sm:$0xff]  }
  0x86   :  { %1754 = vmatpush1.bf16.msra.mxu0 %v3001_v41  ;;  %v3097_v41 = vld [vmem:[#allocation5 + $0x2c] ss:$16 sps:$4 sm:$0xff]  }
  0x87   :  { %1795 = vmatpush1.bf16.msra.mxu1 %v3004_v42  ;;  %1755 = vmatprep.subr.bf16.mxu0 %v3009_v43  ;;  %v3100_v42 = vld [vmem:[#allocation5 + $0x22c] ss:$16 sps:$4 sm:$0xff]   ;;  %v3095_v43 = vld [vmem:[#allocation5 + $0x28] ss:$16 sps:$4 sm:$0xff]  }
  0x88   :  { %1796 = vmatprep.subr.bf16.mxu1 %v3012_v44  ;;  %v3098_v44 = vld [vmem:[#allocation5 + $0x228] ss:$16 sps:$4 sm:$0xff]  }
  0x8a   :  { %1756 = vmatpush2.bf16.msra.mxu0 %v3007_v45  ;;  %v3103_v45 = vld [vmem:[#allocation5 + $0xc] ss:$16 sps:$4 sm:$0xff]  }
  0x8b   :  { %1797 = vmatpush2.bf16.msra.mxu1 %v3010_v46  ;;  %1757 = vmatprep.subr.bf16.mxu0 %v3015_v47  ;;  %v3106_v46 = vld [vmem:[#allocation5 + $0x20c] ss:$16 sps:$4 sm:$0xff]   ;;  %v3101_v47 = vld [vmem:[#allocation5 + $0x8] ss:$16 sps:$4 sm:$0xff]  }
  0x8c   :  { %1798 = vmatprep.subr.bf16.mxu1 %v3018_v49  ;;  %v3104_v49 = vld [vmem:[#allocation5 + $0x208] ss:$16 sps:$4 sm:$0xff]  }
  0x8e   :  { %1758 = vmatpush2.bf16.msra.mxu0 %v3013_v50  ;;  %v3109_v50 = vld [vmem:[#allocation5 + $0x1ec] ss:$16 sps:$4 sm:$0xff]  }
  0x8f   :  { %1799 = vmatpush2.bf16.msra.mxu1 %v3016_v51  ;;  %1759 = vmatprep.subr.bf16.mxu0 %v3021_v53  ;;  %v3112_v51 = vld [vmem:[#allocation5 + $0x3ec] ss:$16 sps:$4 sm:$0xff]   ;;  %v3107_v53 = vld [vmem:[#allocation5 + $0x1e8] ss:$16 sps:$4 sm:$0xff]  }
  0x90   :  { %1800 = vmatprep.subr.bf16.mxu1 %v3024_v54  ;;  %v3110_v54 = vld [vmem:[#allocation5 + $0x3e8] ss:$16 sps:$4 sm:$0xff]  }
  0x92   :  { %1760 = vmatpush2.bf16.msra.mxu0 %v3019_v55  ;;  %v3115_v55 = vld [vmem:[#allocation5 + $0x1cc] ss:$16 sps:$4 sm:$0xff]  }
  0x93   :  { %1801 = vmatpush2.bf16.msra.mxu1 %v3022_v56  ;;  %1761 = vmatprep.subr.bf16.mxu0 %v3027_v57  ;;  %v3118_v56 = vld [vmem:[#allocation5 + $0x3cc] ss:$16 sps:$4 sm:$0xff]   ;;  %v3113_v57 = vld [vmem:[#allocation5 + $0x1c8] ss:$16 sps:$4 sm:$0xff]  }
  0x94   :  { %1802 = vmatprep.subr.bf16.mxu1 %v3030_v58  ;;  %v3116_v58 = vld [vmem:[#allocation5 + $0x3c8] ss:$16 sps:$4 sm:$0xff]  }
  0x96   :  { %1762 = vmatpush2.bf16.msra.mxu0 %v3025_v59  ;;  %v3121_v59 = vld [vmem:[#allocation5 + $0x1ac] ss:$16 sps:$4 sm:$0xff]  }
  0x97   :  { %1803 = vmatpush2.bf16.msra.mxu1 %v3028_v60  ;;  %1763 = vmatprep.subr.bf16.mxu0 %v3033_v61  ;;  %v3124_v60 = vld [vmem:[#allocation5 + $0x3ac] ss:$16 sps:$4 sm:$0xff]   ;;  %v3119_v61 = vld [vmem:[#allocation5 + $0x1a8] ss:$16 sps:$4 sm:$0xff]  }
  0x98   :  { %1804 = vmatprep.subr.bf16.mxu1 %v3036_v62  ;;  %v3122_v62 = vld [vmem:[#allocation5 + $0x3a8] ss:$16 sps:$4 sm:$0xff]  }
  0x9a   :  { %1764 = vmatpush2.bf16.msra.mxu0 %v3031_v63  ;;  %v3127_v63 = vld [vmem:[#allocation5 + $0x18c] ss:$16 sps:$4 sm:$0xff]  }
  0x9b   :  { %1805 = vmatpush2.bf16.msra.mxu1 %v3034_v0  ;;  %1765 = vmatprep.subr.bf16.mxu0 %v3039_v1  ;;  %v3130_v0 = vld [vmem:[#allocation5 + $0x38c] ss:$16 sps:$4 sm:$0xff]   ;;  %v3125_v1 = vld [vmem:[#allocation5 + $0x188] ss:$16 sps:$4 sm:$0xff]  }
  0x9c   :  { %1806 = vmatprep.subr.bf16.mxu1 %v3042_v2  ;;  %v3128_v2 = vld [vmem:[#allocation5 + $0x388] ss:$16 sps:$4 sm:$0xff]  }
  0x9e   :  { %1766 = vmatpush2.bf16.msra.mxu0 %v3037_v3  ;;  %v3133_v3 = vld [vmem:[#allocation5 + $0x16c] ss:$16 sps:$4 sm:$0xff]  }
  0x9f   :  { %1807 = vmatpush2.bf16.msra.mxu1 %v3040_v4  ;;  %1767 = vmatprep.subr.bf16.mxu0 %v3045_v5  ;;  %v3136_v4 = vld [vmem:[#allocation5 + $0x36c] ss:$16 sps:$4 sm:$0xff]   ;;  %v3131_v5 = vld [vmem:[#allocation5 + $0x168] ss:$16 sps:$4 sm:$0xff]  }
  0xa0   :  { %1808 = vmatprep.subr.bf16.mxu1 %v3048_v6  ;;  %v3134_v6 = vld [vmem:[#allocation5 + $0x368] ss:$16 sps:$4 sm:$0xff]  }
  0xa2   :  { %1768 = vmatpush2.bf16.msra.mxu0 %v3043_v9  ;;  %v3139_v9 = vld [vmem:[#allocation5 + $0x14c] ss:$16 sps:$4 sm:$0xff]  }
  0xa3   :  { %1809 = vmatpush2.bf16.msra.mxu1 %v3046_v10  ;;  %1769 = vmatprep.subr.bf16.mxu0 %v3051_v11  ;;  %v3142_v10 = vld [vmem:[#allocation5 + $0x34c] ss:$16 sps:$4 sm:$0xff]   ;;  %v3137_v11 = vld [vmem:[#allocation5 + $0x148] ss:$16 sps:$4 sm:$0xff]  }
  0xa4   :  { %1810 = vmatprep.subr.bf16.mxu1 %v3054_v12  ;;  %v3140_v12 = vld [vmem:[#allocation5 + $0x348] ss:$16 sps:$4 sm:$0xff]  }
  0xa6   :  { %1770 = vmatpush2.bf16.msra.mxu0 %v3049_v13  ;;  %v3145_v13 = vld [vmem:[#allocation5 + $0x12c] ss:$16 sps:$4 sm:$0xff]  }
  0xa7   :  { %1811 = vmatpush2.bf16.msra.mxu1 %v3052_v14  ;;  %1821 = vmatprep.subr.bf16.mxu0 %v3061_v15  ;;  %v3148_v14 = vld [vmem:[#allocation5 + $0x32c] ss:$16 sps:$4 sm:$0xff]   ;;  %v3143_v15 = vld [vmem:[#allocation5 + $0x128] ss:$16 sps:$4 sm:$0xff]  }
  0xa8   :  { %1862 = vmatprep.subr.bf16.mxu1 %v3064_v16  ;;  %v3146_v16 = vld [vmem:[#allocation5 + $0x328] ss:$16 sps:$4 sm:$0xff]  }
  0xa9   :  { %1772 = vmatmul.mubr.bf16.vlgmr.msra.gmra.mxu0 %v3502_v17 }
  0xaa   :  { %1813 = vmatmul.mubr.bf16.vlgmr.msra.gmra.mxu1 %v3506_v18  ;;  %1822 = vmatpush1.bf16.msra.mxu0 %v3059_v19  ;;  %v3151_v19 = vld [vmem:[#allocation5 + $0x10c] ss:$16 sps:$4 sm:$0xff]  }
  0xab   :  { %1863 = vmatpush1.bf16.msra.mxu1 %v3062_v20  ;;  %1823 = vmatprep.subr.bf16.mxu0 %v3067_v21  ;;  %v3154_v20 = vld [vmem:[#allocation5 + $0x30c] ss:$16 sps:$4 sm:$0xff]   ;;  %v3149_v21 = vld [vmem:[#allocation5 + $0x108] ss:$16 sps:$4 sm:$0xff]  }
  0xac   :  { %1864 = vmatprep.subr.bf16.mxu1 %v3070_v22  ;;  %1853 = vmatprep.mubr.bf16.mxu0 %v3474_v48  ;;  %v3086_v48 = vld [vmem:[#allocation5 + $0x268] ss:$16 sps:$4 sm:$0xff]  }
  0xad   :  { %1894 = vmatprep.mubr.bf16.mxu1 %v3476_v52  ;;  %v3091_v52 = vld [vmem:[#allocation5 + $0x4c] ss:$16 sps:$4 sm:$0xff]   ;;  %v3152_v22 = vld [vmem:[#allocation5 + $0x308] ss:$16 sps:$4 sm:$0xff]  }
  0xae   :  { %1824 = vmatpush1.bf16.msra.mxu0 %v3065_v23  ;;  %v3157_v23 = vld [vmem:[#allocation5 + $0x4ec] ss:$16 sps:$4 sm:$0xff]  }
  0xaf   :  { %1865 = vmatpush1.bf16.msra.mxu1 %v3068_v24  ;;  %1825 = vmatprep.subr.bf16.mxu0 %v3073_v25  ;;  %v3160_v24 = vld [vmem:[#allocation5 + $0x6ec] ss:$16 sps:$4 sm:$0xff]   ;;  %v3155_v25 = vld [vmem:[#allocation5 + $0x4e8] ss:$16 sps:$4 sm:$0xff]  }
  0xb0   :  { %1866 = vmatprep.subr.bf16.mxu1 %v3076_v26  ;;  %v3158_v26 = vld [vmem:[#allocation5 + $0x6e8] ss:$16 sps:$4 sm:$0xff]  }
  0xb2   :  { %1826 = vmatpush1.bf16.msra.mxu0 %v3071_v27  ;;  %v3163_v27 = vld [vmem:[#allocation5 + $0x4cc] ss:$16 sps:$4 sm:$0xff]  }
  0xb3   :  { %1867 = vmatpush1.bf16.msra.mxu1 %v3074_v28  ;;  %1827 = vmatprep.subr.bf16.mxu0 %v3079_v29  ;;  %v3166_v28 = vld [vmem:[#allocation5 + $0x6cc] ss:$16 sps:$4 sm:$0xff]   ;;  %v3161_v29 = vld [vmem:[#allocation5 + $0x4c8] ss:$16 sps:$4 sm:$0xff]  }
  0xb4   :  { %1868 = vmatprep.subr.bf16.mxu1 %v3082_v30  ;;  %v3164_v30 = vld [vmem:[#allocation5 + $0x6c8] ss:$16 sps:$4 sm:$0xff]  }
  0xb6   :  { %1828 = vmatpush1.bf16.msra.mxu0 %v3077_v31  ;;  %v3169_v31 = vld [vmem:[#allocation5 + $0x4ac] ss:$16 sps:$4 sm:$0xff]  }
  0xb7   :  { %1869 = vmatpush1.bf16.msra.mxu1 %v3080_v32  ;;  %1829 = vmatprep.subr.bf16.mxu0 %v3085_v33  ;;  %v3172_v32 = vld [vmem:[#allocation5 + $0x6ac] ss:$16 sps:$4 sm:$0xff]   ;;  %v3167_v33 = vld [vmem:[#allocation5 + $0x4a8] ss:$16 sps:$4 sm:$0xff]  }
  0xb8   :  { %1870 = vmatprep.subr.bf16.mxu1 %v3088_v34  ;;  %v3170_v34 = vld [vmem:[#allocation5 + $0x6a8] ss:$16 sps:$4 sm:$0xff]  }
  0xba   :  { %1830 = vmatpush1.bf16.msra.mxu0 %v3083_v35  ;;  %v3175_v35 = vld [vmem:[#allocation5 + $0x48c] ss:$16 sps:$4 sm:$0xff]  }
  0xbb   :  { %1871 = vmatpush1.bf16.msra.mxu1 %v3086_v48  ;;  %1831 = vmatprep.subr.bf16.mxu0 %v3091_v52  ;;  %v3178_v48 = vld [vmem:[#allocation5 + $0x68c] ss:$16 sps:$4 sm:$0xff]  }
  0xbc   :  { %1872 = vmatprep.subr.bf16.mxu1 %v3094_v36  ;;  %v3181_v52 = vld [vmem:[#allocation5 + $0x46c] ss:$16 sps:$4 sm:$0xff]  }
  0xbd   :  { %v3184_v36 = vld [vmem:[#allocation5 + $0x66c] ss:$16 sps:$4 sm:$0xff]  }
  0xbe   :  { %1832 = vmatpush1.bf16.msra.mxu0 %v3089_v39  ;;  %v3179_v39 = vld [vmem:[#allocation5 + $0x468] ss:$16 sps:$4 sm:$0xff]  }
  0xbf   :  { %1873 = vmatpush1.bf16.msra.mxu1 %v3092_v40  ;;  %1833 = vmatprep.subr.bf16.mxu0 %v3097_v41  ;;  %v3190_v40 = vld [vmem:[#allocation5 + $0x64c] ss:$16 sps:$4 sm:$0xff]   ;;  %v3185_v41 = vld [vmem:[#allocation5 + $0x448] ss:$16 sps:$4 sm:$0xff]  }
  0xc0   :  { %1874 = vmatprep.subr.bf16.mxu1 %v3100_v42  ;;  %v3188_v42 = vld [vmem:[#allocation5 + $0x648] ss:$16 sps:$4 sm:$0xff]  }
  0xc2   :  { %1834 = vmatpush1.bf16.msra.mxu0 %v3095_v43  ;;  %v3193_v43 = vld [vmem:[#allocation5 + $0x42c] ss:$16 sps:$4 sm:$0xff]  }
  0xc3   :  { %1875 = vmatpush1.bf16.msra.mxu1 %v3098_v44  ;;  %1835 = vmatprep.subr.bf16.mxu0 %v3103_v45  ;;  %v3196_v44 = vld [vmem:[#allocation5 + $0x62c] ss:$16 sps:$4 sm:$0xff]   ;;  %v3191_v45 = vld [vmem:[#allocation5 + $0x428] ss:$16 sps:$4 sm:$0xff]  }
  0xc4   :  { %1876 = vmatprep.subr.bf16.mxu1 %v3106_v46  ;;  %v3194_v46 = vld [vmem:[#allocation5 + $0x628] ss:$16 sps:$4 sm:$0xff]  }
  0xc6   :  { %1836 = vmatpush1.bf16.msra.mxu0 %v3101_v47  ;;  %v3199_v47 = vld [vmem:[#allocation5 + $0x40c] ss:$16 sps:$4 sm:$0xff]  }
  0xc7   :  { %1877 = vmatpush1.bf16.msra.mxu1 %v3104_v49  ;;  %1837 = vmatprep.subr.bf16.mxu0 %v3109_v50  ;;  %v3202_v49 = vld [vmem:[#allocation5 + $0x60c] ss:$16 sps:$4 sm:$0xff]   ;;  %v3197_v50 = vld [vmem:[#allocation5 + $0x408] ss:$16 sps:$4 sm:$0xff]  }
  0xc8   :  { %1878 = vmatprep.subr.bf16.mxu1 %v3112_v51  ;;  %v3200_v51 = vld [vmem:[#allocation5 + $0x608] ss:$16 sps:$4 sm:$0xff]  }
  0xca   :  { %1838 = vmatpush2.bf16.msra.mxu0 %v3107_v53  ;;  %v3205_v53 = vld [vmem:[#allocation5 + $0x5ec] ss:$16 sps:$4 sm:$0xff]  }
  0xcb   :  { %1879 = vmatpush2.bf16.msra.mxu1 %v3110_v54  ;;  %1839 = vmatprep.subr.bf16.mxu0 %v3115_v55  ;;  %v3208_v54 = vld [vmem:[#allocation5 + $0x7ec] ss:$16 sps:$4 sm:$0xff]   ;;  %v3203_v55 = vld [vmem:[#allocation5 + $0x5e8] ss:$16 sps:$4 sm:$0xff]  }
  0xcc   :  { %1880 = vmatprep.subr.bf16.mxu1 %v3118_v56  ;;  %v3206_v56 = vld [vmem:[#allocation5 + $0x7e8] ss:$16 sps:$4 sm:$0xff]  }
  0xce   :  { %1840 = vmatpush2.bf16.msra.mxu0 %v3113_v57  ;;  %v3211_v57 = vld [vmem:[#allocation5 + $0x5cc] ss:$16 sps:$4 sm:$0xff]  }
  0xcf   :  { %1881 = vmatpush2.bf16.msra.mxu1 %v3116_v58  ;;  %1841 = vmatprep.subr.bf16.mxu0 %v3121_v59  ;;  %v3214_v58 = vld [vmem:[#allocation5 + $0x7cc] ss:$16 sps:$4 sm:$0xff]   ;;  %v3209_v59 = vld [vmem:[#allocation5 + $0x5c8] ss:$16 sps:$4 sm:$0xff]  }
  0xd0   :  { %1882 = vmatprep.subr.bf16.mxu1 %v3124_v60  ;;  %v3212_v60 = vld [vmem:[#allocation5 + $0x7c8] ss:$16 sps:$4 sm:$0xff]  }
  0xd2   :  { %1842 = vmatpush2.bf16.msra.mxu0 %v3119_v61  ;;  %v3217_v61 = vld [vmem:[#allocation5 + $0x5ac] ss:$16 sps:$4 sm:$0xff]  }
  0xd3   :  { %1883 = vmatpush2.bf16.msra.mxu1 %v3122_v62  ;;  %1843 = vmatprep.subr.bf16.mxu0 %v3127_v63  ;;  %v3220_v62 = vld [vmem:[#allocation5 + $0x7ac] ss:$16 sps:$4 sm:$0xff]   ;;  %v3215_v63 = vld [vmem:[#allocation5 + $0x5a8] ss:$16 sps:$4 sm:$0xff]  }
  0xd4   :  { %1884 = vmatprep.subr.bf16.mxu1 %v3130_v0  ;;  %v3218_v0 = vld [vmem:[#allocation5 + $0x7a8] ss:$16 sps:$4 sm:$0xff]  }
  0xd6   :  { %1844 = vmatpush2.bf16.msra.mxu0 %v3125_v1  ;;  %v3223_v1 = vld [vmem:[#allocation5 + $0x58c] ss:$16 sps:$4 sm:$0xff]  }
  0xd7   :  { %1885 = vmatpush2.bf16.msra.mxu1 %v3128_v2  ;;  %1845 = vmatprep.subr.bf16.mxu0 %v3133_v3  ;;  %v3226_v2 = vld [vmem:[#allocation5 + $0x78c] ss:$16 sps:$4 sm:$0xff]   ;;  %v3221_v3 = vld [vmem:[#allocation5 + $0x588] ss:$16 sps:$4 sm:$0xff]  }
  0xd8   :  { %1886 = vmatprep.subr.bf16.mxu1 %v3136_v4  ;;  %v3224_v4 = vld [vmem:[#allocation5 + $0x788] ss:$16 sps:$4 sm:$0xff]  }
  0xda   :  { %1846 = vmatpush2.bf16.msra.mxu0 %v3131_v5  ;;  %v3229_v5 = vld [vmem:[#allocation5 + $0x56c] ss:$16 sps:$4 sm:$0xff]  }
  0xdb   :  { %1887 = vmatpush2.bf16.msra.mxu1 %v3134_v6  ;;  %1847 = vmatprep.subr.bf16.mxu0 %v3139_v9  ;;  %v3232_v6 = vld [vmem:[#allocation5 + $0x76c] ss:$16 sps:$4 sm:$0xff]   ;;  %v3227_v9 = vld [vmem:[#allocation5 + $0x568] ss:$16 sps:$4 sm:$0xff]  }
  0xdc   :  { %1888 = vmatprep.subr.bf16.mxu1 %v3142_v10  ;;  %v3230_v10 = vld [vmem:[#allocation5 + $0x768] ss:$16 sps:$4 sm:$0xff]  }
  0xde   :  { %1848 = vmatpush2.bf16.msra.mxu0 %v3137_v11  ;;  %v3235_v11 = vld [vmem:[#allocation5 + $0x54c] ss:$16 sps:$4 sm:$0xff]  }
  0xdf   :  { %1889 = vmatpush2.bf16.msra.mxu1 %v3140_v12  ;;  %1849 = vmatprep.subr.bf16.mxu0 %v3145_v13  ;;  %v3238_v12 = vld [vmem:[#allocation5 + $0x74c] ss:$16 sps:$4 sm:$0xff]   ;;  %v3233_v13 = vld [vmem:[#allocation5 + $0x548] ss:$16 sps:$4 sm:$0xff]  }
  0xe0   :  { %1890 = vmatprep.subr.bf16.mxu1 %v3148_v14  ;;  %v3236_v14 = vld [vmem:[#allocation5 + $0x748] ss:$16 sps:$4 sm:$0xff]  }
  0xe2   :  { %1850 = vmatpush2.bf16.msra.mxu0 %v3143_v15  ;;  %v3241_v15 = vld [vmem:[#allocation5 + $0x52c] ss:$16 sps:$4 sm:$0xff]  }
  0xe3   :  { %1891 = vmatpush2.bf16.msra.mxu1 %v3146_v16  ;;  %1851 = vmatprep.subr.bf16.mxu0 %v3151_v19  ;;  %v3244_v16 = vld [vmem:[#allocation5 + $0x72c] ss:$16 sps:$4 sm:$0xff]   ;;  %v3239_v19 = vld [vmem:[#allocation5 + $0x528] ss:$16 sps:$4 sm:$0xff]  }
  0xe4   :  { %1892 = vmatprep.subr.bf16.mxu1 %v3154_v20  ;;  %v3242_v20 = vld [vmem:[#allocation5 + $0x728] ss:$16 sps:$4 sm:$0xff]  }
  0xe6   :  { %1852 = vmatpush2.bf16.msra.mxu0 %v3149_v21  ;;  %v3247_v21 = vld [vmem:[#allocation5 + $0x50c] ss:$16 sps:$4 sm:$0xff]  }
  0xe7   :  { %1893 = vmatpush2.bf16.msra.mxu1 %v3152_v22  ;;  %1903 = vmatprep.subr.bf16.mxu0 %v3157_v23  ;;  %v3250_v22 = vld [vmem:[#allocation5 + $0x70c] ss:$16 sps:$4 sm:$0xff]   ;;  %v3245_v23 = vld [vmem:[#allocation5 + $0x508] ss:$16 sps:$4 sm:$0xff]  }
  0xe8   :  { %1944 = vmatprep.subr.bf16.mxu1 %v3160_v24  ;;  %v3248_v24 = vld [vmem:[#allocation5 + $0x708] ss:$16 sps:$4 sm:$0xff]  }
  0xe9   :  { %1854 = vmatmul.mubr.bf16.vlgmr.msra.gmra.mxu0 %v3480_v7  ;;  %v3173_v7 = vld [vmem:[#allocation5 + $0x488] ss:$16 sps:$4 sm:$0xff]  }
  0xea   :  { %1895 = vmatmul.mubr.bf16.vlgmr.msra.gmra.mxu1 %v3482_v8  ;;  %1904 = vmatpush1.bf16.msra.mxu0 %v3155_v25  ;;  %v3176_v8 = vld [vmem:[#allocation5 + $0x688] ss:$16 sps:$4 sm:$0xff]   ;;  %v3253_v25 = vld [vmem:[#allocation7 + $0x74] ss:$8 sps:$4 sm:$0xff]  }
  0xeb   :  { %1945 = vmatpush1.bf16.msra.mxu1 %v3158_v26  ;;  %1905 = vmatprep.subr.bf16.mxu0 %v3163_v27  ;;  %v3251_v26 = vld [vmem:[#allocation7 + $0x70] ss:$8 sps:$4 sm:$0xff]   ;;  %v3256_v27 = vld [vmem:[#allocation7 + $0x64] ss:$8 sps:$4 sm:$0xff]  }
  0xec   :  { %1946 = vmatprep.subr.bf16.mxu1 %v3166_v28  ;;  %1935 = vmatprep.mubr.bf16.mxu0 %v3492_v37  ;;  %v3182_v37 = vld [vmem:[#allocation5 + $0x668] ss:$16 sps:$4 sm:$0xff]  }
  0xed   :  { %1976 = vmatprep.mubr.bf16.mxu1 %v3496_v38  ;;  %v3187_v38 = vld [vmem:[#allocation5 + $0x44c] ss:$16 sps:$4 sm:$0xff]  }
  0xee   :  { %1906 = vmatpush1.bf16.msra.mxu0 %v3161_v29 }
  0xef   :  { %1947 = vmatpush1.bf16.msra.mxu1 %v3164_v30  ;;  %1907 = vmatprep.subr.bf16.mxu0 %v3169_v31  ;;  %v3254_v30 = vld [vmem:[#allocation7 + $0x60] ss:$8 sps:$4 sm:$0xff]  }
  0xf0   :  { %1948 = vmatprep.subr.bf16.mxu1 %v3172_v32 }
  0xf2   :  { %1908 = vmatpush1.bf16.msra.mxu0 %v3167_v33  ;;  %v3259_v33 = vld [vmem:[#allocation7 + $0x54] ss:$8 sps:$4 sm:$0xff]  }
  0xf3   :  { %1949 = vmatpush1.bf16.msra.mxu1 %v3170_v34  ;;  %1909 = vmatprep.subr.bf16.mxu0 %v3175_v35 }
  0xf4   :  { %1950 = vmatprep.subr.bf16.mxu1 %v3178_v48  ;;  %v3257_v48 = vld [vmem:[#allocation7 + $0x50] ss:$8 sps:$4 sm:$0xff]  }
  0xf6   :  { %1910 = vmatpush1.bf16.msra.mxu0 %v3173_v7 }
  0xf7   :  { %1951 = vmatpush1.bf16.msra.mxu1 %v3176_v8  ;;  %1911 = vmatprep.subr.bf16.mxu0 %v3181_v52  ;;  %v3262_v52 = vld [vmem:[#allocation7 + $0x44] ss:$8 sps:$4 sm:$0xff]  }
  0xf8   :  { %1952 = vmatprep.subr.bf16.mxu1 %v3184_v36  ;;  %v3299_v36 = vld [vmem:[#allocation7 + $0x170] ss:$8 sps:$4 sm:$0xff]  }
  0xfa   :  { %1912 = vmatpush1.bf16.msra.mxu0 %v3179_v39  ;;  %v3304_v39 = vld [vmem:[#allocation7 + $0x164] ss:$8 sps:$4 sm:$0xff]  }
  0xfb   :  { %1953 = vmatpush1.bf16.msra.mxu1 %v3182_v37  ;;  %1913 = vmatprep.subr.bf16.mxu0 %v3187_v38  ;;  %v3302_v37 = vld [vmem:[#allocation7 + $0x160] ss:$8 sps:$4 sm:$0xff]   ;;  %v3265_v38 = vld [vmem:[#allocation7 + $0x34] ss:$8 sps:$4 sm:$0xff]  }
  0xfc   :  { %1954 = vmatprep.subr.bf16.mxu1 %v3190_v40  ;;  %v3307_v40 = vld [vmem:[#allocation7 + $0x154] ss:$8 sps:$4 sm:$0xff]  }
  0xfe   :  { %1914 = vmatpush1.bf16.msra.mxu0 %v3185_v41  ;;  %v3263_v41 = vld [vmem:[#allocation7 + $0x30] ss:$8 sps:$4 sm:$0xff]  }
  0xff   :  { %1955 = vmatpush1.bf16.msra.mxu1 %v3188_v42  ;;  %1915 = vmatprep.subr.bf16.mxu0 %v3193_v43  ;;  %v3305_v42 = vld [vmem:[#allocation7 + $0x150] ss:$8 sps:$4 sm:$0xff]   ;;  %v3268_v43 = vld [vmem:[#allocation7 + $0x24] ss:$8 sps:$4 sm:$0xff]  }
 0x100   :  { %1956 = vmatprep.subr.bf16.mxu1 %v3196_v44  ;;  %v3310_v44 = vld [vmem:[#allocation7 + $0x144] ss:$8 sps:$4 sm:$0xff]  }
 0x102   :  { %1916 = vmatpush1.bf16.msra.mxu0 %v3191_v45  ;;  %v3266_v45 = vld [vmem:[#allocation7 + $0x20] ss:$8 sps:$4 sm:$0xff]  }
 0x103   :  { %1957 = vmatpush1.bf16.msra.mxu1 %v3194_v46  ;;  %1917 = vmatprep.subr.bf16.mxu0 %v3199_v47  ;;  %v3308_v46 = vld [vmem:[#allocation7 + $0x140] ss:$8 sps:$4 sm:$0xff]   ;;  %v3271_v47 = vld [vmem:[#allocation7 + $0x14] ss:$8 sps:$4 sm:$0xff]  }
 0x104   :  { %1958 = vmatprep.subr.bf16.mxu1 %v3202_v49  ;;  %v3313_v49 = vld [vmem:[#allocation7 + $0x134] ss:$8 sps:$4 sm:$0xff]  }
 0x106   :  { %1918 = vmatpush1.bf16.msra.mxu0 %v3197_v50  ;;  %v3269_v50 = vld [vmem:[#allocation7 + $0x10] ss:$8 sps:$4 sm:$0xff]  }
 0x107   :  { %1959 = vmatpush1.bf16.msra.mxu1 %v3200_v51  ;;  %1919 = vmatprep.subr.bf16.mxu0 %v3205_v53  ;;  %v3311_v51 = vld [vmem:[#allocation7 + $0x130] ss:$8 sps:$4 sm:$0xff]   ;;  %v3274_v53 = vld [vmem:[#allocation7 + $0x4] ss:$8 sps:$4 sm:$0xff]  }
 0x108   :  { %1960 = vmatprep.subr.bf16.mxu1 %v3208_v54  ;;  %v3316_v54 = vld [vmem:[#allocation7 + $0x124] ss:$8 sps:$4 sm:$0xff]  }
 0x10a   :  { %1920 = vmatpush2.bf16.msra.mxu0 %v3203_v55  ;;  %v3272_v55 = vld [vmem:[#allocation7] ss:$8 sps:$4 sm:$0xff]  }
 0x10b   :  { %1961 = vmatpush2.bf16.msra.mxu1 %v3206_v56  ;;  %1921 = vmatprep.subr.bf16.mxu0 %v3211_v57  ;;  %v3314_v56 = vld [vmem:[#allocation7 + $0x120] ss:$8 sps:$4 sm:$0xff]   ;;  %v3277_v57 = vld [vmem:[#allocation7 + $0xf4] ss:$8 sps:$4 sm:$0xff]  }
 0x10c   :  { %1962 = vmatprep.subr.bf16.mxu1 %v3214_v58  ;;  %v3319_v58 = vld [vmem:[#allocation7 + $0x114] ss:$8 sps:$4 sm:$0xff]  }
 0x10e   :  { %1922 = vmatpush2.bf16.msra.mxu0 %v3209_v59  ;;  %v3275_v59 = vld [vmem:[#allocation7 + $0xf0] ss:$8 sps:$4 sm:$0xff]  }
 0x10f   :  { %1963 = vmatpush2.bf16.msra.mxu1 %v3212_v60  ;;  %1923 = vmatprep.subr.bf16.mxu0 %v3217_v61  ;;  %v3317_v60 = vld [vmem:[#allocation7 + $0x110] ss:$8 sps:$4 sm:$0xff]   ;;  %v3280_v61 = vld [vmem:[#allocation7 + $0xe4] ss:$8 sps:$4 sm:$0xff]  }
 0x110   :  { %1964 = vmatprep.subr.bf16.mxu1 %v3220_v62  ;;  %v3322_v62 = vld [vmem:[#allocation7 + $0x104] ss:$8 sps:$4 sm:$0xff]  }
 0x112   :  { %1924 = vmatpush2.bf16.msra.mxu0 %v3215_v63  ;;  %v3278_v63 = vld [vmem:[#allocation7 + $0xe0] ss:$8 sps:$4 sm:$0xff]  }
 0x113   :  { %1965 = vmatpush2.bf16.msra.mxu1 %v3218_v0  ;;  %1925 = vmatprep.subr.bf16.mxu0 %v3223_v1  ;;  %v3320_v0 = vld [vmem:[#allocation7 + $0x100] ss:$8 sps:$4 sm:$0xff]   ;;  %v3283_v1 = vld [vmem:[#allocation7 + $0xd4] ss:$8 sps:$4 sm:$0xff]  }
 0x114   :  { %1966 = vmatprep.subr.bf16.mxu1 %v3226_v2  ;;  %v3325_v2 = vld [vmem:[#allocation7 + $0x1f4] ss:$8 sps:$4 sm:$0xff]  }
 0x116   :  { %1926 = vmatpush2.bf16.msra.mxu0 %v3221_v3  ;;  %v3281_v3 = vld [vmem:[#allocation7 + $0xd0] ss:$8 sps:$4 sm:$0xff]  }
 0x117   :  { %1967 = vmatpush2.bf16.msra.mxu1 %v3224_v4  ;;  %1927 = vmatprep.subr.bf16.mxu0 %v3229_v5  ;;  %v3323_v4 = vld [vmem:[#allocation7 + $0x1f0] ss:$8 sps:$4 sm:$0xff]   ;;  %v3286_v5 = vld [vmem:[#allocation7 + $0xc4] ss:$8 sps:$4 sm:$0xff]  }
 0x118   :  { %1968 = vmatprep.subr.bf16.mxu1 %v3232_v6  ;;  %v3328_v6 = vld [vmem:[#allocation7 + $0x1e4] ss:$8 sps:$4 sm:$0xff]  }
 0x11a   :  { %1928 = vmatpush2.bf16.msra.mxu0 %v3227_v9  ;;  %v3284_v9 = vld [vmem:[#allocation7 + $0xc0] ss:$8 sps:$4 sm:$0xff]  }
 0x11b   :  { %1969 = vmatpush2.bf16.msra.mxu1 %v3230_v10  ;;  %1929 = vmatprep.subr.bf16.mxu0 %v3235_v11  ;;  %v3326_v10 = vld [vmem:[#allocation7 + $0x1e0] ss:$8 sps:$4 sm:$0xff]   ;;  %v3289_v11 = vld [vmem:[#allocation7 + $0xb4] ss:$8 sps:$4 sm:$0xff]  }
 0x11c   :  { %1970 = vmatprep.subr.bf16.mxu1 %v3238_v12  ;;  %v3331_v12 = vld [vmem:[#allocation7 + $0x1d4] ss:$8 sps:$4 sm:$0xff]  }
 0x11e   :  { %1930 = vmatpush2.bf16.msra.mxu0 %v3233_v13  ;;  %v329_v13 = vlaneseq }
 0x11f   :  { %1971 = vmatpush2.bf16.msra.mxu1 %v3236_v14  ;;  %1931 = vmatprep.subr.bf16.mxu0 %v3241_v15  ;;  %v3287_v14 = vld [vmem:[#allocation7 + $0xb0] ss:$8 sps:$4 sm:$0xff]  }
 0x120   :  { %1972 = vmatprep.subr.bf16.mxu1 %v3244_v16  ;;  %v3329_v15 = vld [vmem:[#allocation7 + $0x1d0] ss:$8 sps:$4 sm:$0xff]   ;;  %v3292_v16 = vld [vmem:[#allocation7 + $0xa4] ss:$8 sps:$4 sm:$0xff]  }
 0x122   :  { %1932 = vmatpush2.bf16.msra.mxu0 %v3239_v19  ;;  %v3334_v19 = vld [vmem:[#allocation7 + $0x1c4] ss:$8 sps:$4 sm:$0xff]  }
 0x123   :  { %1973 = vmatpush2.bf16.msra.mxu1 %v3242_v20  ;;  %1933 = vmatprep.subr.bf16.mxu0 %v3247_v21  ;;  %v3526_v20 = vshrl.u32 %v329_v13, 7  ;;  %v3290_v21 = vld [vmem:[#allocation7 + $0xa0] ss:$8 sps:$4 sm:$0xff]  }
 0x124   :  { %1974 = vmatprep.subr.bf16.mxu1 %v3250_v22  ;;  %v3332_v22 = vld [vmem:[#allocation7 + $0x1c0] ss:$8 sps:$4 sm:$0xff]  }
 0x126   :  { %1934 = vmatpush2.bf16.msra.mxu0 %v3245_v23  ;;  %v3295_v23 = vld [vmem:[#allocation7 + $0x94] ss:$8 sps:$4 sm:$0xff]  }
 0x127   :  { %1975 = vmatpush2.bf16.msra.mxu1 %v3248_v24  ;;  %2397 = vmatprep.subr.bf16.mxu0 %v3253_v25  ;;  %v3337_v24 = vld [vmem:[#allocation7 + $0x1b4] ss:$8 sps:$4 sm:$0xff]   ;;  %v3529_v25 = vsub.s32 0, %v3526_v20 }
 0x129   :  { %v3516_v28 = vpop.f32.mrf.mxu0  ;;  %1936 = vmatmul.mubr.bf16.vlgmr.msra.gmra.mxu0 %v3502_v17  ;;  %v3301_v17 = vld [vmem:[#allocation7 + $0x174] ss:$8 sps:$4 sm:$0xff]  }
 0x12a   :  { %v3518_v29 = vpop.f32.mrf.mxu1  ;;  %1977 = vmatmul.mubr.bf16.vlgmr.msra.gmra.mxu1 %v3506_v18  ;;  %2398 = vmatpush1.bf16.msra.mxu0 %v3251_v26  ;;  %v3260_v18 = vld [vmem:[#allocation7 + $0x40] ss:$8 sps:$4 sm:$0xff]  }
 0x12b   :  { %v3522_v31 = vpop.f32.mrf.mxu0  ;;  %2399 = vmatprep.subr.bf16.mxu0 %v3256_v27  ;;  %2438 = vmatprep.subr.bf16.mxu1 %v3301_v17  ;;  %v3534_v26 = vld [vmem:[%s3566_s2] sm:$0xf]  ;;  %v3537_v27 = vsub.s32 1, %v3526_v20  ;;  %v3340_v17 = vld [vmem:[#allocation7 + $0x1a4] ss:$8 sps:$4 sm:$0xff]  }
 0x12c   :  { %v3524_v32 = vpop.f32.mrf.mxu1  ;;  %2439 = vmatpush1.bf16.msra.mxu1 %v3299_v36 }
 0x12d   :  { %v1695_v34 = vpop.f32.mrf.mxu0  ;;  %2440 = vmatprep.subr.bf16.mxu1 %v3304_v39 }
 0x12e   :  { %v1736_v35 = vpop.f32.mrf.mxu1  ;;  %2400 = vmatpush1.bf16.msra.mxu0 %v3254_v30  ;;  %v3293_v30 = vld [vmem:[#allocation7 + $0x90] ss:$8 sps:$4 sm:$0xff]   ;;  %v3298_v34 = vld [vmem:[#allocation7 + $0x84] ss:$8 sps:$4 sm:$0xff]  }
 0x12f   :  { %v1696_v7 = vpop.f32.mrf.mxu0  ;;  %2401 = vmatprep.subr.bf16.mxu0 %v3259_v33  ;;  %v3335_v33 = vld [vmem:[#allocation7 + $0x1b0] ss:$8 sps:$4 sm:$0xff]   ;;  %v332_v35 = vrot.slane %v3534_v26, %v3529_v25 }
 0x130   :  { %v1737_v8 = vpop.f32.mrf.mxu1  ;;  %2441 = vmatpush1.bf16.msra.mxu1 %v3302_v37  ;;  %v3296_v7 = vld [vmem:[#allocation7 + $0x80] ss:$8 sps:$4 sm:$0xff]  }
 0x131   :  { %2442 = vmatprep.subr.bf16.mxu1 %v3307_v40  ;;  %v1692_v8 = vadd.f32 %v3516_v28, %v332_v35  ;;  %v3338_v37 = vld [vmem:[#allocation7 + $0x1a0] ss:$8 sps:$4 sm:$0xff]  }
 0x132   :  { %2402 = vmatpush1.bf16.msra.mxu0 %v3257_v48  ;;  %v336_v48 = vrot.slane %v3534_v26, %v3537_v27 }
 0x133   :  { %2403 = vmatprep.subr.bf16.mxu0 %v3262_v52  ;;  %v1733_v36 = vadd.f32 %v3518_v29, %v1692_v8 }
 0x134   :  { %2443 = vmatpush1.bf16.msra.mxu1 %v3305_v42  ;;  %v1694_v52 = vadd.f32 %v3522_v31, %v336_v48  ;;  %v3341_v31 = vld [vmem:[#allocation7 + $0x190] ss:$8 sps:$4 sm:$0xff]  }
 0x135   :  { %2444 = vmatprep.subr.bf16.mxu1 %v3310_v44 }
 0x136   :  { %2404 = vmatpush1.bf16.msra.mxu0 %v3260_v18 }
 0x137   :  { %2405 = vmatprep.subr.bf16.mxu0 %v3265_v38  ;;  %v1735_v38 = vadd.f32 %v3524_v32, %v1694_v52 }
 0x138   :  { %2445 = vmatpush1.bf16.msra.mxu1 %v3308_v46 }
 0x139   :  { %2446 = vmatprep.subr.bf16.mxu1 %v3313_v49 }
 0x13a   :  { %2406 = vmatpush1.bf16.msra.mxu0 %v3263_v41 }
 0x13b   :  { %2407 = vmatprep.subr.bf16.mxu0 %v3268_v43 }
 0x13c   :  { %2447 = vmatpush1.bf16.msra.mxu1 %v3311_v51  ;;  %v3346_v51 = vld [vmem:[#allocation7 + $0x184] ss:$8 sps:$4 sm:$0xff]  }
 0x13d   :  { %2448 = vmatprep.subr.bf16.mxu1 %v3316_v54  ;;  %v3344_v54 = vld [vmem:[#allocation7 + $0x180] ss:$8 sps:$4 sm:$0xff]  }
 0x13e   :  { %2408 = vmatpush1.bf16.msra.mxu0 %v3266_v45  ;;  %v3343_v45 = vld [vmem:[#allocation7 + $0x194] ss:$8 sps:$4 sm:$0xff]  }
 0x13f   :  { %2409 = vmatprep.subr.bf16.mxu0 %v3271_v47 }
 0x140   :  { %2449 = vmatpush1.bf16.msra.mxu1 %v3314_v56 }
 0x141   :  { %2450 = vmatprep.subr.bf16.mxu1 %v3319_v58 }
 0x142   :  { %2410 = vmatpush1.bf16.msra.mxu0 %v3269_v50 }
 0x143   :  { %2411 = vmatprep.subr.bf16.mxu0 %v3274_v53 }
 0x144   :  { %2451 = vmatpush1.bf16.msra.mxu1 %v3317_v60 }
 0x145   :  { %2452 = vmatprep.subr.bf16.mxu1 %v3322_v62 }
 0x146   :  { %2412 = vmatpush1.bf16.msra.mxu0 %v3272_v55 }
 0x147   :  { %2413 = vmatprep.subr.bf16.mxu0 %v3277_v57 }
 0x148   :  { %2453 = vmatpush1.bf16.msra.mxu1 %v3320_v0 }
 0x149   :  { %2454 = vmatprep.subr.bf16.mxu1 %v3325_v2  ;;  %v339_v2 = vsub.s32 2, %v3526_v20 }
 0x14a   :  { %2414 = vmatpush2.bf16.msra.mxu0 %v3275_v59 }
 0x14b   :  { %2415 = vmatprep.subr.bf16.mxu0 %v3280_v61 }
 0x14c   :  { %2455 = vmatpush2.bf16.msra.mxu1 %v3323_v4  ;;  %v340_v4 = vrot.slane %v3534_v26, %v339_v2 }
 0x14d   :  { %2456 = vmatprep.subr.bf16.mxu1 %v3328_v6 }
 0x14e   :  { %2416 = vmatpush2.bf16.msra.mxu0 %v3278_v63 }
 0x14f   :  { %2417 = vmatprep.subr.bf16.mxu0 %v3283_v1 }
 0x150   :  { %2457 = vmatpush2.bf16.msra.mxu1 %v3326_v10 }
 0x151   :  { %2458 = vmatprep.subr.bf16.mxu1 %v3331_v12 }
 0x152   :  { %2418 = vmatpush2.bf16.msra.mxu0 %v3281_v3  ;;  %v343_v3 = vsub.s32 3, %v3526_v20 }
 0x153   :  { %2419 = vmatprep.subr.bf16.mxu0 %v3286_v5 }
 0x154   :  { %2459 = vmatpush2.bf16.msra.mxu1 %v3329_v15  ;;  %v344_v5 = vrot.slane %v3534_v26, %v343_v3 }
 0x155   :  { %2460 = vmatprep.subr.bf16.mxu1 %v3334_v19 }
 0x156   :  { %2420 = vmatpush2.bf16.msra.mxu0 %v3284_v9 }
 0x157   :  { %2421 = vmatprep.subr.bf16.mxu0 %v3289_v11 }
 0x158   :  { %2461 = vmatpush2.bf16.msra.mxu1 %v3332_v22 }
 0x159   :  { %2462 = vmatprep.subr.bf16.mxu1 %v3337_v24 }
 0x15a   :  { %2422 = vmatpush2.bf16.msra.mxu0 %v3287_v14 }
 0x15b   :  { %2423 = vmatprep.subr.bf16.mxu0 %v3292_v16 }
 0x15c   :  { %2463 = vmatpush2.bf16.msra.mxu1 %v3335_v33 }
 0x15d   :  { %2464 = vmatprep.subr.bf16.mxu1 %v3340_v17 }
 0x15e   :  { %2424 = vmatpush2.bf16.msra.mxu0 %v3290_v21 }
 0x15f   :  { %2425 = vmatprep.subr.bf16.mxu0 %v3295_v23 }
 0x160   :  { %2465 = vmatpush2.bf16.msra.mxu1 %v3338_v37 }
 0x161   :  { %2466 = vmatprep.subr.bf16.mxu1 %v3343_v45 }
 0x162   :  { %2426 = vmatpush2.bf16.msra.mxu0 %v3293_v30 }
 0x163   :  { %2427 = vmatprep.subr.bf16.mxu0 %v3298_v34 }
 0x164   :  { %2467 = vmatpush2.bf16.msra.mxu1 %v3341_v31 }
 0x165   :  { %2468 = vmatprep.subr.bf16.mxu1 %v3346_v51 }
 0x166   :  { %2428 = vmatpush2.bf16.msra.mxu0 %v3296_v7 }
 0x168   :  { %2469 = vmatpush2.bf16.msra.mxu1 %v3344_v54 }
 0x169   :  { %v1773_v39 = vpop.f32.mrf.mxu0 }
 0x16a   :  { %v1814_v18 = vpop.f32.mrf.mxu1  ;;  %v1774_v40 = vadd.f32 %v1773_v39, %v1733_v36  ;;  %v2065_v39 = vld [vmem:[%s3568_s4] sm:$0x3] }
 0x16b   :  { %v1775_v41 = vpop.f32.mrf.mxu0  ;;  %v2074_v37 = vrot.slane %v2065_v39, %v3537_v27 }
 0x16c   :  { %v1816_v42 = vpop.f32.mrf.mxu1  ;;  %v1815_v43 = vadd.f32 %v1814_v18, %v1774_v40  ;;  %v1776_v44 = vadd.f32 %v1775_v41, %v1735_v38  ;;  %v2070_v18 = vrot.slane %v2065_v39, %v3529_v25 }
 0x16d   :  { %v1777_v28 = vpop.f32.mrf.mxu0 }
 0x16e   :  { %v1818_v46 = vpop.f32.mrf.mxu1  ;;  %vm1985_vm0 = vcmp.gt.f32.partialorder %v1815_v43, 0.0  ;;  %v1989_v47 = vmul.f32 0.2, %v1815_v43  ;;  %v1817_v29 = vadd.f32 %v1816_v42, %v1776_v44 }
 0x16f   :  { %v1778_v49 = vpop.f32.mrf.mxu0 }
 0x170   :  { %v1819_v50 = vpop.f32.mrf.mxu1  ;;  %vm1986_vm1 = vcmp.gt.f32.partialorder %v1817_v29, 0.0  ;;  %v1990_v32 = vmul.f32 0.2, %v1817_v29  ;;  %v1993_v53 = vsel %vm1985_vm0, %v1815_v43, %v1989_v47  ;;  %v2485_v43 = vld [vmem:[%s3569_s5] sm:$0x3] }
 0x171   :  { %v1997_v57 = vpack.c.bf16 %v1993_v53, %v1993_v53  ;;  %v2490_v31 = vrot.slane %v2485_v43, %v3529_v25  ;;  %v2494_v47 = vrot.slane %v2485_v43, %v3537_v27 }
 0x172   :  { %v1994_v55 = vsel %vm1986_vm1, %v1817_v29, %v1990_v32 }
 0x173   :  { %v1998_v56 = vpack.c.bf16 %v1994_v55, %v1994_v55  ;;  %v2851_v55 = vld [vmem:[#allocation2] ss:$0 sm:$0xff] }
 0x175   :  { %2429 = vmatprep.mubr.bf16.mxu0 %v1998_v56 }
 0x176   :  { %2430 = vmatmul.mubr.bf16.vlgmr.msra.gmra.mxu0 %v1997_v57 }
 0x1a9   :  { %v1855_v58 = vpop.f32.mrf.mxu0 }
 0x1aa   :  { %v1896_v59 = vpop.f32.mrf.mxu1  ;;  %v1856_v6 = vadd.f32 %v1855_v58, %v340_v4 }
 0x1ab   :  { %v1857_v60 = vpop.f32.mrf.mxu0 }
 0x1ac   :  { %v1898_v61 = vpop.f32.mrf.mxu1  ;;  %v1858_v9 = vadd.f32 %v1857_v60, %v344_v5  ;;  %v1897_v10 = vadd.f32 %v1896_v59, %v1856_v6 }
 0x1ad   :  { %v1859_v62 = vpop.f32.mrf.mxu0 }
 0x1ae   :  { %v1900_v63 = vpop.f32.mrf.mxu1  ;;  %v1899_v13 = vadd.f32 %v1898_v61, %v1858_v9 }
 0x1af   :  { %v1860_v0 = vpop.f32.mrf.mxu0 }
 0x1b0   :  { %v1901_v1 = vpop.f32.mrf.mxu1 }
 0x1e9   :  { %v1937_v11 = vpop.f32.mrf.mxu0 }
 0x1ea   :  { %v1978_v12 = vpop.f32.mrf.mxu1  ;;  %v1938_v14 = vadd.f32 %v1937_v11, %v1897_v10 }
 0x1eb   :  { %v1939_v15 = vpop.f32.mrf.mxu0 }
 0x1ec   :  { %v1980_v16 = vpop.f32.mrf.mxu1  ;;  %v1979_v19 = vadd.f32 %v1978_v12, %v1938_v14  ;;  %v1940_v21 = vadd.f32 %v1939_v15, %v1899_v13 }
 0x1ed   :  { %v1941_v22 = vpop.f32.mrf.mxu0 }
 0x1ee   :  { %v1982_v23 = vpop.f32.mrf.mxu1  ;;  %vm1987_vm2 = vcmp.gt.f32.partialorder %v1979_v19, 0.0  ;;  %v1991_v24 = vmul.f32 0.2, %v1979_v19  ;;  %v1981_v20 = vadd.f32 %v1980_v16, %v1940_v21 }
 0x1ef   :  { %v1942_v30 = vpop.f32.mrf.mxu0 }
 0x1f0   :  { %v1983_v33 = vpop.f32.mrf.mxu1  ;;  %vm1988_vm3 = vcmp.gt.f32.partialorder %v1981_v20, 0.0  ;;  %v1992_v26 = vmul.f32 0.2, %v1981_v20  ;;  %v1995_v34 = vsel %vm1987_vm2, %v1979_v19, %v1991_v24 }
 0x1f1   :  { %v1999_v7 = vpack.c.bf16 %v1995_v34, %v1995_v34 }
 0x1f2   :  { %v1996_v35 = vsel %vm1988_vm3, %v1981_v20, %v1992_v26 }
 0x1f3   :  { %v2000_v48 = vpack.c.bf16 %v1996_v35, %v1996_v35 }
 0x1f5   :  { %2470 = vmatprep.mubr.bf16.mxu1 %v2000_v48 }
 0x1f6   :  { %2471 = vmatmul.mubr.bf16.vlgmr.msra.gmra.mxu1 %v1999_v7 }
 0x236   :  { %v2431_v8 = vpop.f32.mrf.mxu0 }
 0x237   :  { %v2432_v38 = vadd.f32 %v2431_v8, %v2070_v18 }
 0x238   :  { %v2433_v52 = vpop.f32.mrf.mxu0 }
 0x239   :  { %v2434_v41 = vadd.f32 %v2433_v52, %v2074_v37 }
 0x23a   :  { %v2435_v36 = vpop.f32.mrf.mxu0 }
 0x23c   :  { %v2436_v17 = vpop.f32.mrf.mxu0 }
 0x2b6   :  { %v2472_v40 = vpop.f32.mrf.mxu1 }
 0x2b7   :  { %v2473_v42 = vadd.f32 %v2472_v40, %v2432_v38 }
 0x2b8   :  { %v2474_v44 = vpop.f32.mrf.mxu1 }
 0x2b9   :  { %vm2479_vm4 = vcmp.gt.f32.partialorder %v2473_v42, 0.0  ;;  %v2481_v45 = vmul.f32 0.2, %v2473_v42  ;;  %v2475_v28 = vadd.f32 %v2474_v44, %v2434_v41 }
 0x2ba   :  { %v2476_v46 = vpop.f32.mrf.mxu1 }
 0x2bb   :  { %vm2480_vm5 = vcmp.gt.f32.partialorder %v2475_v28, 0.0  ;;  %v2482_v29 = vmul.f32 0.2, %v2475_v28  ;;  %v2483_v49 = vsel %vm2479_vm4, %v2473_v42, %v2481_v45 }
 0x2bc   :  { %v2477_v50 = vpop.f32.mrf.mxu1  ;;  %v2497_v51 = vmul.f32 %v2490_v31, %v2483_v49 }
 0x2bd   :  { %v2484_v32 = vsel %vm2480_vm5, %v2475_v28, %v2482_v29 }
 0x2be   :  { %v2498_v53 = vmul.f32 %v2494_v47, %v2484_v32 }
 0x2c0   :  { %v2499_v54 = vadd.f32 %v2498_v53, %v2497_v51 }
 0x2c2   :  { %2500 = vadd.xlane.f32.xlu0 %v2499_v54 }
 0x34b   :  { %v2501_v56 = vpop.xlane.xlu0 %2500 }
 0x34c   :  { %v2509_v57 = vadd.f32 %v2851_v55, %v2501_v56 }
 0x34e   :  { %v2510_v58 = vsub.f32 0.0, %v2509_v57 }
 0x350   :  { %v2511_v59 = vmul.f32 1.442695, %v2510_v58 }
 0x352   :  { %3347 = vpow2.f32 %v2511_v59 }
 0x35f   :  { %v3348_v60 = vpop.eup %3347 }
 0x360   :  { %v2513_v61 = vadd.f32 1.0, %v3348_v60 }
 0x362   :  { %3349 = vrcp.f32 %v2513_v61 }
 0x36f   :  { %v3350_v25 = vpop.eup %3349 }
 0x370   :  { %2516 = vst.msk [vmem:[%s3571_s7] sm:$0xff] %vm2515_vm6, %v3350_v25 }
 0x371   :  { %2521 = vsyncpa [#allocation4], 1 }
 0x372   :  { %2522 = vsyncpa [#allocation6], 1 }

</bundles_post_ra>
